<compile_context>
chip_gen: v7x
topology: tpu7x:2x2x1
jax: 0.10.0
libtpu: 0.0.40
codegen_flags: <defaults>
</compile_context>

<pallas_src>
import functools

import jax
import jax.numpy as jnp
from jax.experimental import pallas as pl
from jax.experimental.pallas import tpu as pltpu


LANE = 128  # TPU lane width


# ----------------------------------------------------------------------------
# Fused Bottleneck kernel (one grid step == one image)
# ----------------------------------------------------------------------------
def _bottleneck_kernel(x_ref, w1_ref, b1_ref, w2_ref, b2_ref, w3_ref, b3_ref,
                       *rest, H, W, Ho, Wo, stride, has_downsample):
    if has_downsample:
        wd_ref, bd_ref, o_ref, y1p_ref = rest
    else:
        o_ref, y1p_ref = rest

    Cin = x_ref.shape[-1]
    Cp = w1_ref.shape[-1]            # hidden width, zero-padded to 128 lanes

    # ---- conv1 (1x1) + bn1 + relu :  (H*W, Cin) @ (Cin, Cp) on the MXU ----
    x3d = x_ref[...]                                    # (H, W, Cin)
    x2d = x3d.reshape(H * W, Cin)
    y1 = jnp.dot(x2d, w1_ref[...], preferred_element_type=jnp.float32)
    y1 = jnp.maximum(y1 + b1_ref[...], 0.0)             # (H*W, Cp)

    # ---- stage y1 into a zero-padded (pad=1) VMEM image for the 3x3 conv ----
    y1p_ref[...] = jnp.zeros_like(y1p_ref)
    y1p_ref[1:H + 1, 1:W + 1, :] = y1.reshape(H, W, Cp)

    # ---- conv2 (3x3, stride, pad=1) + bn2 + relu : 9 accumulated matmuls ----
    acc = jnp.zeros((Ho * Wo, Cp), jnp.float32)
    for kh in range(3):
        for kw in range(3):
            win = y1p_ref[pl.ds(kh, Ho, stride), pl.ds(kw, Wo, stride), :]
            acc += jnp.dot(win.reshape(Ho * Wo, Cp), w2_ref[kh * 3 + kw],
                           preferred_element_type=jnp.float32)
    y2 = jnp.maximum(acc + b2_ref[...], 0.0)             # (Ho*Wo, Cp)

    # ---- conv3 (1x1) + bn3 ----
    y3 = jnp.dot(y2, w3_ref[...],
                 preferred_element_type=jnp.float32) + b3_ref[...]

    # ---- shortcut: 1x1 stride conv + bn, or identity ----
    if has_downsample:
        xs = x_ref[pl.ds(0, Ho, stride), pl.ds(0, Wo, stride), :]
        sc = jnp.dot(xs.reshape(Ho * Wo, Cin), wd_ref[...],
                     preferred_element_type=jnp.float32) + bd_ref[...]
    else:
        sc = x2d                                         # Cin == Cout, stride == 1

    # ---- residual add + relu ----
    o_ref[...] = jnp.maximum(y3 + sc, 0.0).astype(o_ref.dtype)


def bottleneck_pallas(x_nhwc, w1f, b1f, w2f, b2f, w3f, b3f, wdf, bdf, *, stride):
    N, H, W, Cin = x_nhwc.shape
    Cp = w1f.shape[1]
    Cout = w3f.shape[1]
    Ho = (H - 1) // stride + 1
    Wo = (W - 1) // stride + 1
    has_ds = wdf is not None

    def _resident(arr):
        # full-array block, constant index_map -> stays resident in VMEM
        return pl.BlockSpec(arr.shape, lambda n: (0,) * arr.ndim)

    in_specs = [pl.BlockSpec((None, H, W, Cin), lambda n: (n, 0, 0, 0))]
    args = [x_nhwc]
    for a in (w1f, b1f, w2f, b2f, w3f, b3f):
        in_specs.append(_resident(a))
        args.append(a)
    if has_ds:
        for a in (wdf, bdf):
            in_specs.append(_resident(a))
            args.append(a)

    kern = functools.partial(_bottleneck_kernel, H=H, W=W, Ho=Ho, Wo=Wo,
                             stride=stride, has_downsample=has_ds)

    out = pl.pallas_call(
        kern,
        out_shape=jax.ShapeDtypeStruct((N, Ho * Wo, Cout), jnp.float32),
        grid=(N,),
        in_specs=in_specs,
        out_specs=pl.BlockSpec((None, Ho * Wo, Cout), lambda n: (n, 0, 0)),
        scratch_shapes=[pltpu.VMEM((H + 2, W + 2, Cp), jnp.float32)],
        compiler_params=pltpu.CompilerParams(
            dimension_semantics=("parallel",),
            vmem_limit_bytes=32 * 1024 * 1024),
    )(*args)
    return out.reshape(N, Ho, Wo, Cout)


# ----------------------------------------------------------------------------
# Trace-time glue: BN folding, channel padding, parameter init
# ----------------------------------------------------------------------------
def fold_bn(gamma, beta, rmean, rvar, eps=1e-5):
    scale = gamma / jnp.sqrt(rvar + eps)
    bias = beta - rmean * scale
    return scale, bias


def bottleneck_forward(x_nchw, params, in_planes, planes, stride):
    out_c = 4 * planes
    N, Cin, H, W = x_nchw.shape
    pr = params["w1"].shape[0]
    has_ds = (stride != 1) or (in_planes != out_c)
    Cp = ((pr + LANE - 1) // LANE) * LANE          # hidden width -> lane multiple

    # Fold BN into weights, zero-pad hidden channels to Cp (exact: padded
    # channels stay 0 through relu and multiply zero weight rows afterwards).
    s1, b1 = fold_bn(params["g1"], params["b1"], params["m1"], params["v1"])
    s2, b2 = fold_bn(params["g2"], params["b2"], params["m2"], params["v2"])
    s3, b3 = fold_bn(params["g3"], params["b3"], params["m3"], params["v3"])

    w1f = jnp.pad(params["w1"][:, :, 0, 0].T * s1[None, :],
                  ((0, 0), (0, Cp - pr)))                          # (Cin, Cp)
    b1f = jnp.pad(b1, (0, Cp - pr)).reshape(1, Cp)
    w2 = jnp.transpose(params["w2"], (2, 3, 1, 0)) * s2[None, None, None, :]
    w2f = jnp.pad(w2.reshape(9, pr, pr),
                  ((0, 0), (0, Cp - pr), (0, Cp - pr)))            # (9, Cp, Cp)
    b2f = jnp.pad(b2, (0, Cp - pr)).reshape(1, Cp)
    w3f = jnp.pad(params["w3"][:, :, 0, 0].T * s3[None, :],
                  ((0, Cp - pr), (0, 0)))                          # (Cp, out_c)
    b3f = b3.reshape(1, out_c)

    if has_ds:
        sd, bd = fold_bn(params["gd"], params["bd"], params["md"], params["vd"])
        wdf = params["wd"][:, :, 0, 0].T * sd[None, :]             # (Cin, out_c)
        bdf = bd.reshape(1, out_c)
    else:
        wdf, bdf = None, None

    x = jnp.transpose(x_nchw, (0, 2, 3, 1))                        # NCHW -> NHWC
    out = bottleneck_pallas(x, w1f, b1f, w2f, b2f, w3f, b3f, wdf, bdf,
                            stride=stride)
    return jnp.transpose(out, (0, 3, 1, 2))                        # -> NCHW


def make_params(key, in_planes, planes, honey, index):
    pr = int(planes * honey[index] / 10)
    out_c = 4 * planes  # expansion = 4
    ks = jax.random.split(key, 12)

    def nrm(k, shape):
        return 0.1 * jax.random.normal(k, shape, dtype=jnp.float32)

    p = {}
    # conv weights in PyTorch OIHW layout
    p["w1"] = nrm(ks[0], (pr, in_planes, 1, 1))
    p["w2"] = nrm(ks[1], (pr, pr, 3, 3))
    p["w3"] = nrm(ks[2], (out_c, pr, 1, 1))
    p["wd"] = nrm(ks[3], (out_c, in_planes, 1, 1))
    for name, c, kg, kb in (("1", pr, 4, 5), ("2", pr, 6, 7),
                            ("3", out_c, 8, 9), ("d", out_c, 10, 11)):
        p[f"g{name}"] = 1.0 + 0.1 * jax.random.normal(ks[kg], (c,), jnp.float32)
        p[f"b{name}"] = 0.1 * jax.random.normal(ks[kb], (c,), jnp.float32)
        p[f"m{name}"] = jnp.zeros((c,), jnp.float32)
        p[f"v{name}"] = jnp.ones((c,), jnp.float32)
    return p, pr, out_c


# ----------------------------------------------------------------------------
# Pure-JAX reference (lax conv, NCHW) for correctness check
# ----------------------------------------------------------------------------
def reference_forward(x, p, in_planes, planes, stride):
    def conv(x, w, s, pad):
        return jax.lax.conv_general_dilated(
            x, w, (s, s), pad, dimension_numbers=("NCHW", "OIHW", "NCHW"))

    def bn(x, g, b, m, v, eps=1e-5):
        sc = (g / jnp.sqrt(v + eps)).reshape(1, -1, 1, 1)
        bs = (b - m * g / jnp.sqrt(v + eps)).reshape(1, -1, 1, 1)
        return x * sc + bs

    out_c = 4 * planes
    o = jax.nn.relu(bn(conv(x, p["w1"], 1, "VALID"),
                       p["g1"], p["b1"], p["m1"], p["v1"]))
    o = jax.nn.relu(bn(conv(o, p["w2"], stride, ((1, 1), (1, 1))),
                       p["g2"], p["b2"], p["m2"], p["v2"]))
    o = bn(conv(o, p["w3"], 1, "VALID"), p["g3"], p["b3"], p["m3"], p["v3"])
    if stride != 1 or in_planes != out_c:
        sc = bn(conv(x, p["wd"], stride, "VALID"),
                p["gd"], p["bd"], p["md"], p["vd"])
    else:
        sc = x
    return jax.nn.relu(o + sc)


if __name__ == "__main__":
    honey, index = [5] * 10, 0
    # (in_planes, planes, stride): first config exercises the stride-2
    # downsample branch, second exercises the identity-shortcut branch.
    configs = [(16, 8, 2), (32, 8, 1)]

    key = jax.random.PRNGKey(0)
    for in_planes, planes, stride in configs:
        key, kx, kp = jax.random.split(key, 3)
        x = jax.random.normal(kx, (2, in_planes, 16, 16), dtype=jnp.float32)
        params, pr, out_c = make_params(kp, in_planes, planes, honey, index)

        out = bottleneck_forward(x, params, in_planes, planes, stride)
        out = jax.block_until_ready(out)

        ref = reference_forward(x, params, in_planes, planes, stride)
        Ho = (16 - 1) // stride + 1
        assert out.shape == (2, out_c, Ho, Ho), out.shape
        err = float(jnp.max(jnp.abs(out - ref)))
        assert jnp.allclose(out, ref, atol=1e-3, rtol=1e-3), err

    print("KERNEL_OK")
</pallas_src>

<mosaic_0001>
module attributes {stable_mosaic.version = 11 : i64} {
  func.func @_bottleneck_kernel(%arg0: i32, %arg1: memref<1x16x16x16xf32, #tpu.memory_space<vmem>>, %arg2: memref<16x128xf32, #tpu.memory_space<vmem>>, %arg3: memref<1x128xf32, #tpu.memory_space<vmem>>, %arg4: memref<9x128x128xf32, #tpu.memory_space<vmem>>, %arg5: memref<1x128xf32, #tpu.memory_space<vmem>>, %arg6: memref<128x32xf32, #tpu.memory_space<vmem>>, %arg7: memref<1x32xf32, #tpu.memory_space<vmem>>, %arg8: memref<16x32xf32, #tpu.memory_space<vmem>>, %arg9: memref<1x32xf32, #tpu.memory_space<vmem>>, %arg10: memref<1x64x32xf32, #tpu.memory_space<vmem>>, %arg11: memref<18x18x128xf32, #tpu.memory_space<vmem>>) attributes {dimension_semantics = [#tpu.dimension_semantics<parallel>], iteration_bounds = array<i64: 2>, scalar_prefetch = 0 : i64, scratch_operands = 1 : i64, tpu.core_type = #tpu.core_type<tc>, window_params = [{transform_indices = @transform_0, window_bounds = array<i64: 1, 16, 16, 16>}, {pipeline_mode = #tpu.pipeline_mode<synchronous>, transform_indices = @transform_1, window_bounds = array<i64: 16, 128>}, {pipeline_mode = #tpu.pipeline_mode<synchronous>, transform_indices = @transform_2, window_bounds = array<i64: 1, 128>}, {pipeline_mode = #tpu.pipeline_mode<synchronous>, transform_indices = @transform_3, window_bounds = array<i64: 9, 128, 128>}, {pipeline_mode = #tpu.pipeline_mode<synchronous>, transform_indices = @transform_4, window_bounds = array<i64: 1, 128>}, {pipeline_mode = #tpu.pipeline_mode<synchronous>, transform_indices = @transform_5, window_bounds = array<i64: 128, 32>}, {pipeline_mode = #tpu.pipeline_mode<synchronous>, transform_indices = @transform_6, window_bounds = array<i64: 1, 32>}, {pipeline_mode = #tpu.pipeline_mode<synchronous>, transform_indices = @transform_7, window_bounds = array<i64: 16, 32>}, {pipeline_mode = #tpu.pipeline_mode<synchronous>, transform_indices = @transform_8, window_bounds = array<i64: 1, 32>}, {transform_indices = @transform_9, window_bounds = array<i64: 1, 64, 32>}]} {
    %c0 = arith.constant 0 : index
    %c0_0 = arith.constant 0 : index
    %c0_1 = arith.constant 0 : index
    %c0_2 = arith.constant 0 : index
    %0 = vector.load %arg1[%c0, %c0_0, %c0_1, %c0_2] : memref<1x16x16x16xf32, #tpu.memory_space<vmem>>, vector<1x16x16x16xf32>
    %1 = vector.shape_cast %0 : vector<1x16x16x16xf32> to vector<16x16x16xf32>
    %2 = vector.shape_cast %1 : vector<16x16x16xf32> to vector<256x16xf32>
    %c0_3 = arith.constant 0 : index
    %c0_4 = arith.constant 0 : index
    %3 = vector.load %arg2[%c0_3, %c0_4] : memref<16x128xf32, #tpu.memory_space<vmem>>, vector<16x128xf32>
    %cst = arith.constant dense<0.000000e+00> : vector<256x128xf32>
    %4 = tpu.matmul %2, %3, %cst {dimension_numbers = #tpu.dot_dimension_numbers<[1], [0], [0], [1], [0, 0, 1, 1], [], []>} : vector<256x16xf32>, vector<16x128xf32>, vector<256x128xf32> -> vector<256x128xf32>
    %c0_5 = arith.constant 0 : index
    %c0_6 = arith.constant 0 : index
    %5 = vector.load %arg3[%c0_5, %c0_6] : memref<1x128xf32, #tpu.memory_space<vmem>>, vector<1x128xf32>
    %6 = vector.broadcast %5 : vector<1x128xf32> to vector<256x128xf32>
    %7 = arith.addf %4, %6 : vector<256x128xf32>
    %cst_7 = arith.constant 0.000000e+00 : f32
    %8 = vector.broadcast %cst_7 : f32 to vector<256x128xf32>
    %9 = arith.maximumf %7, %8 : vector<256x128xf32>
    %cst_8 = arith.constant 0.000000e+00 : f32
    %10 = vector.broadcast %cst_8 : f32 to vector<18x18x128xf32>
    %c0_9 = arith.constant 0 : index
    %c0_10 = arith.constant 0 : index
    %c0_11 = arith.constant 0 : index
    %11 = vector.load %arg11[%c0_9, %c0_10, %c0_11] : memref<18x18x128xf32, #tpu.memory_space<vmem>>, vector<18x18x128xf32>
    tpu.vector_store %arg11[%c0_9, %c0_10, %c0_11], %10 {strides = array<i32>} : memref<18x18x128xf32, #tpu.memory_space<vmem>>, vector<18x18x128xf32>,
    %12 = vector.shape_cast %9 : vector<256x128xf32> to vector<16x16x128xf32>
    %c1 = arith.constant 1 : index
    %c1_12 = arith.constant 1 : index
    %c0_13 = arith.constant 0 : index
    %13 = vector.load %arg11[%c1, %c1_12, %c0_13] : memref<18x18x128xf32, #tpu.memory_space<vmem>>, vector<16x16x128xf32>
    tpu.vector_store %arg11[%c1, %c1_12, %c0_13], %12 {strides = array<i32>} : memref<18x18x128xf32, #tpu.memory_space<vmem>>, vector<16x16x128xf32>,
    %cst_14 = arith.constant 0.000000e+00 : f32
    %14 = vector.broadcast %cst_14 : f32 to vector<64x128xf32>
    %c0_15 = arith.constant 0 : index
    %c0_16 = arith.constant 0 : index
    %c0_17 = arith.constant 0 : index
    %15 = tpu.strided_load %arg11[%c0_15, %c0_16, %c0_17] {strides = array<i32: 2, 2, 1>} : memref<18x18x128xf32, #tpu.memory_space<vmem>>, vector<8x8x128xf32>
    %16 = vector.shape_cast %15 : vector<8x8x128xf32> to vector<64x128xf32>
    %c0_18 = arith.constant 0 : index
    %c0_19 = arith.constant 0 : index
    %c0_20 = arith.constant 0 : index
    %17 = vector.load %arg4[%c0_18, %c0_19, %c0_20] : memref<9x128x128xf32, #tpu.memory_space<vmem>>, vector<1x128x128xf32>
    %18 = vector.shape_cast %17 : vector<1x128x128xf32> to vector<128x128xf32>
    %cst_21 = arith.constant dense<0.000000e+00> : vector<64x128xf32>
    %19 = tpu.matmul %16, %18, %cst_21 {dimension_numbers = #tpu.dot_dimension_numbers<[1], [0], [0], [1], [0, 0, 1, 1], [], []>} : vector<64x128xf32>, vector<128x128xf32>, vector<64x128xf32> -> vector<64x128xf32>
    %20 = arith.addf %14, %19 : vector<64x128xf32>
    %c0_22 = arith.constant 0 : index
    %c1_23 = arith.constant 1 : index
    %c0_24 = arith.constant 0 : index
    %21 = tpu.strided_load %arg11[%c0_22, %c1_23, %c0_24] {strides = array<i32: 2, 2, 1>} : memref<18x18x128xf32, #tpu.memory_space<vmem>>, vector<8x8x128xf32>
    %22 = vector.shape_cast %21 : vector<8x8x128xf32> to vector<64x128xf32>
    %c1_25 = arith.constant 1 : index
    %c0_26 = arith.constant 0 : index
    %c0_27 = arith.constant 0 : index
    %23 = vector.load %arg4[%c1_25, %c0_26, %c0_27] : memref<9x128x128xf32, #tpu.memory_space<vmem>>, vector<1x128x128xf32>
    %24 = vector.shape_cast %23 : vector<1x128x128xf32> to vector<128x128xf32>
    %cst_28 = arith.constant dense<0.000000e+00> : vector<64x128xf32>
    %25 = tpu.matmul %22, %24, %cst_28 {dimension_numbers = #tpu.dot_dimension_numbers<[1], [0], [0], [1], [0, 0, 1, 1], [], []>} : vector<64x128xf32>, vector<128x128xf32>, vector<64x128xf32> -> vector<64x128xf32>
    %26 = arith.addf %20, %25 : vector<64x128xf32>
    %c0_29 = arith.constant 0 : index
    %c2 = arith.constant 2 : index
    %c0_30 = arith.constant 0 : index
    %27 = tpu.strided_load %arg11[%c0_29, %c2, %c0_30] {strides = array<i32: 2, 2, 1>} : memref<18x18x128xf32, #tpu.memory_space<vmem>>, vector<8x8x128xf32>
    %28 = vector.shape_cast %27 : vector<8x8x128xf32> to vector<64x128xf32>
    %c2_31 = arith.constant 2 : index
    %c0_32 = arith.constant 0 : index
    %c0_33 = arith.constant 0 : index
    %29 = vector.load %arg4[%c2_31, %c0_32, %c0_33] : memref<9x128x128xf32, #tpu.memory_space<vmem>>, vector<1x128x128xf32>
    %30 = vector.shape_cast %29 : vector<1x128x128xf32> to vector<128x128xf32>
    %cst_34 = arith.constant dense<0.000000e+00> : vector<64x128xf32>
    %31 = tpu.matmul %28, %30, %cst_34 {dimension_numbers = #tpu.dot_dimension_numbers<[1], [0], [0], [1], [0, 0, 1, 1], [], []>} : vector<64x128xf32>, vector<128x128xf32>, vector<64x128xf32> -> vector<64x128xf32>
    %32 = arith.addf %26, %31 : vector<64x128xf32>
    %c1_35 = arith.constant 1 : index
    %c0_36 = arith.constant 0 : index
    %c0_37 = arith.constant 0 : index
    %33 = tpu.strided_load %arg11[%c1_35, %c0_36, %c0_37] {strides = array<i32: 2, 2, 1>} : memref<18x18x128xf32, #tpu.memory_space<vmem>>, vector<8x8x128xf32>
    %34 = vector.shape_cast %33 : vector<8x8x128xf32> to vector<64x128xf32>
    %c3 = arith.constant 3 : index
    %c0_38 = arith.constant 0 : index
    %c0_39 = arith.constant 0 : index
    %35 = vector.load %arg4[%c3, %c0_38, %c0_39] : memref<9x128x128xf32, #tpu.memory_space<vmem>>, vector<1x128x128xf32>
    %36 = vector.shape_cast %35 : vector<1x128x128xf32> to vector<128x128xf32>
    %cst_40 = arith.constant dense<0.000000e+00> : vector<64x128xf32>
    %37 = tpu.matmul %34, %36, %cst_40 {dimension_numbers = #tpu.dot_dimension_numbers<[1], [0], [0], [1], [0, 0, 1, 1], [], []>} : vector<64x128xf32>, vector<128x128xf32>, vector<64x128xf32> -> vector<64x128xf32>
    %38 = arith.addf %32, %37 : vector<64x128xf32>
    %c1_41 = arith.constant 1 : index
    %c1_42 = arith.constant 1 : index
    %c0_43 = arith.constant 0 : index
    %39 = tpu.strided_load %arg11[%c1_41, %c1_42, %c0_43] {strides = array<i32: 2, 2, 1>} : memref<18x18x128xf32, #tpu.memory_space<vmem>>, vector<8x8x128xf32>
    %40 = vector.shape_cast %39 : vector<8x8x128xf32> to vector<64x128xf32>
    %c4 = arith.constant 4 : index
    %c0_44 = arith.constant 0 : index
    %c0_45 = arith.constant 0 : index
    %41 = vector.load %arg4[%c4, %c0_44, %c0_45] : memref<9x128x128xf32, #tpu.memory_space<vmem>>, vector<1x128x128xf32>
    %42 = vector.shape_cast %41 : vector<1x128x128xf32> to vector<128x128xf32>
    %cst_46 = arith.constant dense<0.000000e+00> : vector<64x128xf32>
    %43 = tpu.matmul %40, %42, %cst_46 {dimension_numbers = #tpu.dot_dimension_numbers<[1], [0], [0], [1], [0, 0, 1, 1], [], []>} : vector<64x128xf32>, vector<128x128xf32>, vector<64x128xf32> -> vector<64x128xf32>
    %44 = arith.addf %38, %43 : vector<64x128xf32>
    %c1_47 = arith.constant 1 : index
    %c2_48 = arith.constant 2 : index
    %c0_49 = arith.constant 0 : index
    %45 = tpu.strided_load %arg11[%c1_47, %c2_48, %c0_49] {strides = array<i32: 2, 2, 1>} : memref<18x18x128xf32, #tpu.memory_space<vmem>>, vector<8x8x128xf32>
    %46 = vector.shape_cast %45 : vector<8x8x128xf32> to vector<64x128xf32>
    %c5 = arith.constant 5 : index
    %c0_50 = arith.constant 0 : index
    %c0_51 = arith.constant 0 : index
    %47 = vector.load %arg4[%c5, %c0_50, %c0_51] : memref<9x128x128xf32, #tpu.memory_space<vmem>>, vector<1x128x128xf32>
    %48 = vector.shape_cast %47 : vector<1x128x128xf32> to vector<128x128xf32>
    %cst_52 = arith.constant dense<0.000000e+00> : vector<64x128xf32>
    %49 = tpu.matmul %46, %48, %cst_52 {dimension_numbers = #tpu.dot_dimension_numbers<[1], [0], [0], [1], [0, 0, 1, 1], [], []>} : vector<64x128xf32>, vector<128x128xf32>, vector<64x128xf32> -> vector<64x128xf32>
    %50 = arith.addf %44, %49 : vector<64x128xf32>
    %c2_53 = arith.constant 2 : index
    %c0_54 = arith.constant 0 : index
    %c0_55 = arith.constant 0 : index
    %51 = tpu.strided_load %arg11[%c2_53, %c0_54, %c0_55] {strides = array<i32: 2, 2, 1>} : memref<18x18x128xf32, #tpu.memory_space<vmem>>, vector<8x8x128xf32>
    %52 = vector.shape_cast %51 : vector<8x8x128xf32> to vector<64x128xf32>
    %c6 = arith.constant 6 : index
    %c0_56 = arith.constant 0 : index
    %c0_57 = arith.constant 0 : index
    %53 = vector.load %arg4[%c6, %c0_56, %c0_57] : memref<9x128x128xf32, #tpu.memory_space<vmem>>, vector<1x128x128xf32>
    %54 = vector.shape_cast %53 : vector<1x128x128xf32> to vector<128x128xf32>
    %cst_58 = arith.constant dense<0.000000e+00> : vector<64x128xf32>
    %55 = tpu.matmul %52, %54, %cst_58 {dimension_numbers = #tpu.dot_dimension_numbers<[1], [0], [0], [1], [0, 0, 1, 1], [], []>} : vector<64x128xf32>, vector<128x128xf32>, vector<64x128xf32> -> vector<64x128xf32>
    %56 = arith.addf %50, %55 : vector<64x128xf32>
    %c2_59 = arith.constant 2 : index
    %c1_60 = arith.constant 1 : index
    %c0_61 = arith.constant 0 : index
    %57 = tpu.strided_load %arg11[%c2_59, %c1_60, %c0_61] {strides = array<i32: 2, 2, 1>} : memref<18x18x128xf32, #tpu.memory_space<vmem>>, vector<8x8x128xf32>
    %58 = vector.shape_cast %57 : vector<8x8x128xf32> to vector<64x128xf32>
    %c7 = arith.constant 7 : index
    %c0_62 = arith.constant 0 : index
    %c0_63 = arith.constant 0 : index
    %59 = vector.load %arg4[%c7, %c0_62, %c0_63] : memref<9x128x128xf32, #tpu.memory_space<vmem>>, vector<1x128x128xf32>
    %60 = vector.shape_cast %59 : vector<1x128x128xf32> to vector<128x128xf32>
    %cst_64 = arith.constant dense<0.000000e+00> : vector<64x128xf32>
    %61 = tpu.matmul %58, %60, %cst_64 {dimension_numbers = #tpu.dot_dimension_numbers<[1], [0], [0], [1], [0, 0, 1, 1], [], []>} : vector<64x128xf32>, vector<128x128xf32>, vector<64x128xf32> -> vector<64x128xf32>
    %62 = arith.addf %56, %61 : vector<64x128xf32>
    %c2_65 = arith.constant 2 : index
    %c2_66 = arith.constant 2 : index
    %c0_67 = arith.constant 0 : index
    %63 = tpu.strided_load %arg11[%c2_65, %c2_66, %c0_67] {strides = array<i32: 2, 2, 1>} : memref<18x18x128xf32, #tpu.memory_space<vmem>>, vector<8x8x128xf32>
    %64 = vector.shape_cast %63 : vector<8x8x128xf32> to vector<64x128xf32>
    %c8 = arith.constant 8 : index
    %c0_68 = arith.constant 0 : index
    %c0_69 = arith.constant 0 : index
    %65 = vector.load %arg4[%c8, %c0_68, %c0_69] : memref<9x128x128xf32, #tpu.memory_space<vmem>>, vector<1x128x128xf32>
    %66 = vector.shape_cast %65 : vector<1x128x128xf32> to vector<128x128xf32>
    %cst_70 = arith.constant dense<0.000000e+00> : vector<64x128xf32>
    %67 = tpu.matmul %64, %66, %cst_70 {dimension_numbers = #tpu.dot_dimension_numbers<[1], [0], [0], [1], [0, 0, 1, 1], [], []>} : vector<64x128xf32>, vector<128x128xf32>, vector<64x128xf32> -> vector<64x128xf32>
    %68 = arith.addf %62, %67 : vector<64x128xf32>
    %c0_71 = arith.constant 0 : index
    %c0_72 = arith.constant 0 : index
    %69 = vector.load %arg5[%c0_71, %c0_72] : memref<1x128xf32, #tpu.memory_space<vmem>>, vector<1x128xf32>
    %70 = vector.broadcast %69 : vector<1x128xf32> to vector<64x128xf32>
    %71 = arith.addf %68, %70 : vector<64x128xf32>
    %cst_73 = arith.constant 0.000000e+00 : f32
    %72 = vector.broadcast %cst_73 : f32 to vector<64x128xf32>
    %73 = arith.maximumf %71, %72 : vector<64x128xf32>
    %c0_74 = arith.constant 0 : index
    %c0_75 = arith.constant 0 : index
    %74 = vector.load %arg6[%c0_74, %c0_75] : memref<128x32xf32, #tpu.memory_space<vmem>>, vector<128x32xf32>
    %cst_76 = arith.constant dense<0.000000e+00> : vector<64x32xf32>
    %75 = tpu.matmul %73, %74, %cst_76 {dimension_numbers = #tpu.dot_dimension_numbers<[1], [0], [0], [1], [0, 0, 1, 1], [], []>} : vector<64x128xf32>, vector<128x32xf32>, vector<64x32xf32> -> vector<64x32xf32>
    %c0_77 = arith.constant 0 : index
    %c0_78 = arith.constant 0 : index
    %76 = vector.load %arg7[%c0_77, %c0_78] : memref<1x32xf32, #tpu.memory_space<vmem>>, vector<1x32xf32>
    %77 = vector.broadcast %76 : vector<1x32xf32> to vector<64x32xf32>
    %78 = arith.addf %75, %77 : vector<64x32xf32>
    %c0_79 = arith.constant 0 : index
    %c0_80 = arith.constant 0 : index
    %c0_81 = arith.constant 0 : index
    %c0_82 = arith.constant 0 : index
    %79 = tpu.strided_load %arg1[%c0_79, %c0_80, %c0_81, %c0_82] {strides = array<i32: 1, 2, 2, 1>} : memref<1x16x16x16xf32, #tpu.memory_space<vmem>>, vector<1x8x8x16xf32>
    %80 = vector.shape_cast %79 : vector<1x8x8x16xf32> to vector<8x8x16xf32>
    %81 = vector.shape_cast %80 : vector<8x8x16xf32> to vector<64x16xf32>
    %c0_83 = arith.constant 0 : index
    %c0_84 = arith.constant 0 : index
    %82 = vector.load %arg8[%c0_83, %c0_84] : memref<16x32xf32, #tpu.memory_space<vmem>>, vector<16x32xf32>
    %cst_85 = arith.constant dense<0.000000e+00> : vector<64x32xf32>
    %83 = tpu.matmul %81, %82, %cst_85 {dimension_numbers = #tpu.dot_dimension_numbers<[1], [0], [0], [1], [0, 0, 1, 1], [], []>} : vector<64x16xf32>, vector<16x32xf32>, vector<64x32xf32> -> vector<64x32xf32>
    %c0_86 = arith.constant 0 : index
    %c0_87 = arith.constant 0 : index
    %84 = vector.load %arg9[%c0_86, %c0_87] : memref<1x32xf32, #tpu.memory_space<vmem>>, vector<1x32xf32>
    %85 = vector.broadcast %84 : vector<1x32xf32> to vector<64x32xf32>
    %86 = arith.addf %83, %85 : vector<64x32xf32>
    %87 = arith.addf %78, %86 : vector<64x32xf32>
    %cst_88 = arith.constant 0.000000e+00 : f32
    %88 = vector.broadcast %cst_88 : f32 to vector<64x32xf32>
    %89 = arith.maximumf %87, %88 : vector<64x32xf32>
    %c0_89 = arith.constant 0 : index
    %c0_90 = arith.constant 0 : index
    %c0_91 = arith.constant 0 : index
    %90 = vector.load %arg10[%c0_89, %c0_90, %c0_91] : memref<1x64x32xf32, #tpu.memory_space<vmem>>, vector<1x64x32xf32>
    %91 = vector.shape_cast %90 : vector<1x64x32xf32> to vector<64x32xf32>
    %92 = vector.shape_cast %89 : vector<64x32xf32> to vector<1x64x32xf32>
    tpu.vector_store %arg10[%c0_89, %c0_90, %c0_91], %92 {strides = array<i32>} : memref<1x64x32xf32, #tpu.memory_space<vmem>>, vector<1x64x32xf32>,
    return
  }
  func.func @transform_0(%arg0: i32) -> (i32, i32, i32, i32) {
    %c0_i32 = arith.constant 0 : i32
    %c0_i32_0 = arith.constant 0 : i32
    %c0_i32_1 = arith.constant 0 : i32
    %c0_i32_2 = arith.constant 0 : i32
    return %arg0, %c0_i32, %c0_i32_0, %c0_i32_1 : i32, i32, i32, i32
  }
  func.func @transform_1(%arg0: i32) -> (i32, i32) {
    %c0_i32 = arith.constant 0 : i32
    %c0_i32_0 = arith.constant 0 : i32
    %c0_i32_1 = arith.constant 0 : i32
    return %c0_i32, %c0_i32_0 : i32, i32
  }
  func.func @transform_2(%arg0: i32) -> (i32, i32) {
    %c0_i32 = arith.constant 0 : i32
    %c0_i32_0 = arith.constant 0 : i32
    %c0_i32_1 = arith.constant 0 : i32
    return %c0_i32, %c0_i32_0 : i32, i32
  }
  func.func @transform_3(%arg0: i32) -> (i32, i32, i32) {
    %c0_i32 = arith.constant 0 : i32
    %c0_i32_0 = arith.constant 0 : i32
    %c0_i32_1 = arith.constant 0 : i32
    %c0_i32_2 = arith.constant 0 : i32
    return %c0_i32, %c0_i32_0, %c0_i32_1 : i32, i32, i32
  }
  func.func @transform_4(%arg0: i32) -> (i32, i32) {
    %c0_i32 = arith.constant 0 : i32
    %c0_i32_0 = arith.constant 0 : i32
    %c0_i32_1 = arith.constant 0 : i32
    return %c0_i32, %c0_i32_0 : i32, i32
  }
  func.func @transform_5(%arg0: i32) -> (i32, i32) {
    %c0_i32 = arith.constant 0 : i32
    %c0_i32_0 = arith.constant 0 : i32
    %c0_i32_1 = arith.constant 0 : i32
    return %c0_i32, %c0_i32_0 : i32, i32
  }
  func.func @transform_6(%arg0: i32) -> (i32, i32) {
    %c0_i32 = arith.constant 0 : i32
    %c0_i32_0 = arith.constant 0 : i32
    %c0_i32_1 = arith.constant 0 : i32
    return %c0_i32, %c0_i32_0 : i32, i32
  }
  func.func @transform_7(%arg0: i32) -> (i32, i32) {
    %c0_i32 = arith.constant 0 : i32
    %c0_i32_0 = arith.constant 0 : i32
    %c0_i32_1 = arith.constant 0 : i32
    return %c0_i32, %c0_i32_0 : i32, i32
  }
  func.func @transform_8(%arg0: i32) -> (i32, i32) {
    %c0_i32 = arith.constant 0 : i32
    %c0_i32_0 = arith.constant 0 : i32
    %c0_i32_1 = arith.constant 0 : i32
    return %c0_i32, %c0_i32_0 : i32, i32
  }
  func.func @transform_9(%arg0: i32) -> (i32, i32, i32) {
    %c0_i32 = arith.constant 0 : i32
    %c0_i32_0 = arith.constant 0 : i32
    %c0_i32_1 = arith.constant 0 : i32
    return %arg0, %c0_i32, %c0_i32_0 : i32, i32, i32
  }
}

</mosaic_0001>

<bundles_post_ra>
// kernel: tpu_custom_call.1
= control target key start
LH: loop header
LB: loop body
LE: loop exit
PB: predicated region body
PF: predicated region fallthrough
CT: control target
= control target key end

     0   :  { %14 = vsyncpa [#allocation4], 0  ;;  %s4434_s0 = inlined_call_operand.hbm [shape: f32[2,16,16,16], index: 0, kind: input, shape index: {}]   ;;  %s4435_s1 = inlined_call_operand.vmem [shape: f32[16,128], index: 1, kind: input, shape index: {}]   ;;  %s4436_s2 = inlined_call_operand.vmem [shape: f32[1,128], index: 2, kind: input, shape index: {}]   ;;  %s4437_s3 = inlined_call_operand.hbm [shape: f32[9,128,128], index: 3, kind: input, shape index: {}]   ;;  %s4438_s4 = inlined_call_operand.vmem [shape: f32[1,128], index: 4, kind: input, shape index: {}]   ;;  %s4439_s5 = inlined_call_operand.vmem [shape: f32[128,32], index: 5, kind: input, shape index: {}]   ;;  %s4440_s6 = inlined_call_operand.vmem [shape: f32[1,32], index: 6, kind: input, shape index: {}]   ;;  %s4441_s7 = inlined_call_operand.vmem [shape: f32[16,32], index: 7, kind: input, shape index: {}]   ;;  %s4442_s8 = inlined_call_operand.vmem [shape: f32[1,32], index: 8, kind: input, shape index: {}]   ;;  %s4443_s9 = inlined_call_operand.vmem [shape: f32[2,64,32], index: 9, kind: output, shape index: {}]  }
   0x1   :  { %16 = vsyncpa [#allocation4 + $0x1], 0 }
   0x2   :  { %17 = vsyncpa [#allocation6], 0  ;;  %s4078_s30 = smov 0   ;;  %s4080_s10 = smov 0  }
   0x3   :  { %s4082_s11 = smov 0   ;;  %s4084_s12 = smov 0  }
   0x4 LB: > { %s4097_s13 = sadd.s32 4294967295, %s4021_s12   ;;  %p43_p0 = scmp.ne.s32.totalorder %s4013_s10, %s4009_s30  ;;  %s4021_s12 = sphi %s4084_s12, %s4458_s12   ;;  %s4017_s11 = sphi %s4082_s11, %s4457_s11   ;;  %s4013_s10 = sphi %s4080_s10, %s4456_s10   ;;  %s4009_s30 = sphi %s4078_s30, %s4455_s30  }
   0x5   : > { %p4444_p1 = scmp.eq.s32.totalorder %s4097_s13, 0  ;;  %p2598_p2 = scmp.ge.s32.totalorder %s4021_s12, 1 }
   0x6   : > { %p248_p3 = scmp.lt.s32.totalorder %s4021_s12, 3  ;;  %s4023_s16 = smov [#allocation5]  }
   0x7   : > { %p4105_p4 = por %p4444_p1, %p43_p0  ;;  %s266_s17 = sshll.u32 %s4023_s16, 4  ;;  %s267_s17 = int_to_ptr.vmem [resolvable:$true] %s266_s17 }
   0x8   : > { %p4109_p5 = pnand %p2598_p2, %p248_p3  ;;  %s4122_s19 = sadd.s32 1, %s4021_s12  }
   0x9   : > { %s4447_s14 = scalar_select %p4105_p4, 1, 0 }
   0xa   : > { %s4448_s15 = scalar_select %p4109_p5, 1, 0 }
   0xb   : > { %p3878_p6 = pneg %p4109_p5  ;;  %s30_s20 = sadd.s32 1, %s4017_s11 }
   0xc   : > { %s27_s21 = ssub.s32 %s4021_s12, %s4122_s19  ;;  %s3925_s24 = scalar_lea.hbm %s4437_s3, 18432 }
   0xd   : > { %p4117_p7 = pnand %p3878_p6, %p4444_p1  ;;  %p3926_p8 = scmp.ne.s32.totalorder %s4437_s3, %s3925_s24 }
   0xe   : > { %p3932_p12 = scmp.lt.u32.totalorder %s3925_s24, %s4437_s3 }
   0xf   : > { %p3927_p9 = pneg %p4117_p7 }
  0x11   : > { %p3928_p10 = pnand %p3927_p9, %p3926_p8 }
  0x13   : > { %p3929_p11 = pneg %p3928_p10 }
  0x15   : > { %p3934_p13 = pnand %p3932_p12, %p3929_p11 }
  0x17   : > { %3937 = shalt.err (!%p3934_p13)
}
  0x18   : > { %s3938_s29 = scalar_lea.vmem %s267_s17, 18432  ;;  %p3946_p6 = scmp.lt.s32.totalorder %s267_s17, %s267_s17 }
  0x19   : > { %p3939_p0 = scmp.ne.s32.totalorder %s267_s17, %s3938_s29  ;;  %p3947_p1 = scmp.lt.s32.totalorder %s3938_s29, %s3938_s29 }
  0x1b   : > { %p3941_p2 = pnand %p3939_p0, %p3927_p9  ;;  %p3948_p4 = por %p3947_p1, %p3946_p6 }
  0x1d   : > { %p3942_p3 = pneg %p3941_p2 }
  0x1f   : > { %p3949_p5 = pnand %p3948_p4, %p3942_p3 }
  0x21   : > { %3952 = shalt.err (!%p3949_p5)
}
  0x22   : > { %s4024_s30 = smov 128   ;;  %s4025_s16 = smov 8  }
  0x23   : > { %3881 = dma.hbm_to_vmem [thread:$0]  (!%p4117_p7), %s4437_s3, 18432, %s267_s17, [#allocation6], %s4024_s30, %s4024_s30, %s4025_s16  }
  0x24   : > { %p28_p1 = scmp.eq.s32.totalorder %s27_s21, 0  ;;  %p37_p4 = scmp.ne.s32.totalorder %s4017_s11, %s4013_s10 }
  0x25   : > { %p38_p5 = scmp.eq.s32.totalorder %s4021_s12, 0  ;;  %p3887_p8 = scmp.lt.s32.totalorder %s4021_s12, 2 }
  0x26   : > { %s4151_s24 = scalar_select %p28_p1, %s4017_s11, %s30_s20  }
  0x27   : > { %p39_p9 = por %p38_p5, %p37_p4  ;;  %s295_s25 = sand.u32 1, %s4017_s11  }
  0x28   : > { %s2601_s26 = sshll.u32 %s295_s25, 8  ;;  %s2662_s27 = sshll.u32 %s4021_s12, 12 }
  0x29   : > { %s4158_s18 = scalar_lea.hbm %s4434_s0, %s2662_s27  ;;  %s299_s17 = scalar_lea.vmem [#allocation3], %s2601_s26 }
  0x2a   : > { %s306_s21 = sshll.u32 %s299_s17, 4  ;;  %p4162_p7 = pnand %p3887_p8, %p39_p9  ;;  %s4160_s21 = int_to_ptr.vmem [resolvable:$true] %s306_s21 }
  0x2b   : > { %s4166_s12 = scalar_lea.sflag [#allocation4], %s295_s25  ;;  %s3953_s22 = scalar_lea.hbm %s4158_s18, 4096 }
  0x2c   : > { %p3954_p10 = scmp.ne.s32.totalorder %s4158_s18, %s3953_s22  ;;  %p3955_p11 = pneg %p4162_p7 }
  0x2d   : > { %s3958_s27 = scalar_lea.hbm %s4434_s0, 8192  ;;  %p3959_p0 = scmp.lt.u32.totalorder %s4158_s18, %s4434_s0 }
  0x2e   : > { %p3956_p12 = pnand %p3955_p11, %p3954_p10  ;;  %p3960_p2 = scmp.lt.u32.totalorder %s3958_s27, %s3953_s22 }
  0x2f   : > { %p3962_p6 = scmp.lt.u32.totalorder %s3953_s22, %s4158_s18 }
  0x30   : > { %p3957_p13 = pneg %p3956_p12  ;;  %p3961_p3 = por %p3960_p2, %p3959_p0 }
  0x32   : > { %p3963_p1 = por %p3962_p6, %p3961_p3 }
  0x34   : > { %p3964_p4 = pnand %p3963_p1, %p3957_p13 }
  0x36   : > { %3967 = shalt.err (!%p3964_p4)
}
  0x37   : > { %s3968_s25 = scalar_lea.vmem %s4160_s21, 4096  ;;  %s4026_s17 = smov [#allocation3]  }
  0x38   : > { %p3969_p5 = scmp.ne.s32.totalorder %s4160_s21, %s3968_s25  ;;  %s3973_s23 = sshll.u32 %s4026_s17, 4  ;;  %s3974_s23 = int_to_ptr.vmem [resolvable:$false] %s3973_s23 }
  0x39   : > { %s3975_s26 = scalar_lea.vmem %s3974_s23, 8192  ;;  %p3976_p10 = scmp.lt.s32.totalorder %s4160_s21, %s3974_s23 }
  0x3a   : > { %p3971_p8 = pnand %p3969_p5, %p3955_p11  ;;  %p3977_p12 = scmp.lt.s32.totalorder %s3975_s26, %s3968_s25 }
  0x3c   : > { %p3972_p9 = pneg %p3971_p8  ;;  %p3978_p0 = por %p3977_p12, %p3976_p10 }
  0x3e   : > { %p3979_p2 = pnand %p3978_p0, %p3972_p9 }
  0x40   : > { %3982 = shalt.err (!%p3979_p2)
}
  0x41   : > { %3885 = dma.hbm_to_vmem [thread:$0]  (!%p4162_p7), %s4158_s18, 4096, %s4160_s21, %s4166_s12, %s4024_s30, %s4024_s30, %s4025_s16  }
  0x42   : > { %p4451_p11 = scmp.ne.s32.totalorder %s4448_s15, 0 }
  0x43   : > { %s320_s22 = sand.u32 (!%p4451_p11), 1, %s4013_s10   ;;  %p4452_p13 = scmp.ne.s32.totalorder (!%p4451_p11), %s4447_s14, 0 }
  0x44   : > { %318 = sbr.rel (%p4451_p11) target bundleno = 966 (0x3c6), region = 56  ;;  %s2605_s27 = sshll.u32 (!%p4451_p11), %s320_s22, 8 }
  0x45   : > { %s321_s28 = scalar_lea.sflag (!%p4451_p11), [#allocation4], %s320_s22  ;;  %s4200_s29 = scalar_lea.vmem (!%p4451_p11), [#allocation3], %s2605_s27 }
  0x4b   : > { %4000 = dma.done.wait (%p4452_p13), %s321_s28, 4096  }
  0x4c   : > { %4002 = vsyncadd (%p4452_p13), %s321_s28, 4294963200  ;;  %p4453_p3 = scmp.eq.s32.totalorder %s4097_s13, 0 }
  0x4e   : > { %4004 = dma.done.wait (%p4453_p3), [#allocation6], 18432   ;;  %p4454_p7 = pmov %p4453_p3 }
  0x4f   : > { %v4027_v0 = vmov 0.0   ;;  %vm409_vm0 = vcmask 130048   ;;  %v400_v1 = vld [vmem:[%s4435_s1] sm:$0xff]  ;;  %v401_v2 = vld [vmem:[%s4435_s1 + $0x8] sm:$0xff]  ;;  %v368_v3 = vld [vmem:[%s4200_s29] sm:$0xff]  ;;  %p363_p6 = scmp.lt.s32.totalorder %s4097_s13, 1 }
  0x50   : > { %4006 = vsyncadd (%p4454_p7), [#allocation6], 4294948864  ;;  %763 = vst [vmem:[#allocation2] sm:$0xff] %v4027_v0  ;;  %v3456_v4 = vpack.c.bf16 %v401_v2, %v400_v1  ;;  %2952 = vmatprep.mubr.msk.f32.mxu0 %vm409_vm0, %v368_v3  ;;  %v369_v5 = vld [vmem:[%s4200_s29 + $0x8] sm:$0xff]  ;;  %v370_v6 = vld [vmem:[%s4200_s29 + $0x10] sm:$0xff]  ;;  %vm2465_vm1 = vcmask 261120  }
  0x51   : > { %764 = vst [vmem:[#allocation2 + $0x8] sm:$0xff] %v4027_v0  ;;  %765 = vst [vmem:[#allocation2 + $0x10] sm:$0x3] %v4027_v0  ;;  %v371_v7 = vld [vmem:[%s4200_s29 + $0x18] sm:$0xff]  ;;  %v372_v8 = vld [vmem:[%s4200_s29 + $0x20] sm:$0xff]  ;;  %s4460_s13 = smov (!%p363_p6, %s4097_s13), 1 }
  0x52   : > { %766 = vst [vmem:[#allocation2 + $0x18] sm:$0xff] %v4027_v0  ;;  %767 = vst [vmem:[#allocation2 + $0x20] sm:$0xff] %v4027_v0  ;;  %3457 = vmatprep.subr.bf16.mxu0 %v3456_v4  ;;  %v373_v9 = vld [vmem:[%s4200_s29 + $0x28] sm:$0xff]  ;;  %v898_v10 = vld [vmem:[#allocation5 + $0x80] sm:$0xff]  ;;  %s2663_s16 = sshll.u32 %s4460_s13, 6 }
  0x53   : > { %768 = vst [vmem:[#allocation2 + $0x28] sm:$0x3] %v4027_v0  ;;  %769 = vst [vmem:[#allocation2 + $0x30] sm:$0xff] %v4027_v0  ;;  %3459 = vmatpush3.bf16.msra.mxu0 %v3456_v4  ;;  %v899_v11 = vld [vmem:[#allocation5 + $0x88] sm:$0xff]  ;;  %v900_v13 = vld [vmem:[#allocation5 + $0x90] sm:$0xff]  ;;  %s367_s21 = scalar_lea.vmem %s4443_s9, %s2663_s16 }
  0x54   : > { %770 = vst [vmem:[#allocation2 + $0x38] sm:$0xff] %v4027_v0  ;;  %771 = vst [vmem:[#allocation2 + $0x40] sm:$0x3] %v4027_v0  ;;  %v3460_v12 = vpack.c.bf16 %v899_v11, %v898_v10  ;;  %v901_v14 = vld [vmem:[#allocation5 + $0x98] sm:$0xff]  ;;  %v1286_v15 = vld [vmem:[#allocation5 + $0x180] sm:$0xff] }
  0x55   : > { %772 = vst [vmem:[#allocation2 + $0x48] sm:$0xff] %v4027_v0  ;;  %773 = vst [vmem:[#allocation2 + $0x50] sm:$0xff] %v4027_v0  ;;  %v374_v16 = vld [vmem:[%s4200_s29 + $0x30] sm:$0xff]  ;;  %v3464_v17 = vpack.c.bf16 %v901_v14, %v900_v13  ;;  %v1287_v18 = vld [vmem:[#allocation5 + $0x188] sm:$0xff] }
  0x56   : > { %774 = vst [vmem:[#allocation2 + $0x58] sm:$0x3] %v4027_v0  ;;  %775 = vst [vmem:[#allocation2 + $0x60] sm:$0xff] %v4027_v0  ;;  %2953 = vmatmul.mubr.msk.f32.vlgmr.msra.gmra.mrb[0].mxu0 %vm409_vm0, %v369_v5  ;;  %v902_v19 = vld [vmem:[#allocation5 + $0xa0] sm:$0xff]  ;;  %3461 = vmatprep.subr.bf16.mxu0 %v3460_v12  ;;  %v3556_v20 = vpack.c.bf16 %v1287_v18, %v1286_v15  ;;  %v903_v21 = vld [vmem:[#allocation5 + $0xa8] sm:$0xff] }
  0x57   : > { %776 = vst [vmem:[#allocation2 + $0x68] sm:$0xff] %v4027_v0  ;;  %777 = vst [vmem:[#allocation2 + $0x70] sm:$0x3] %v4027_v0  ;;  %2955 = vmatprep.mubr.msk.f32.mxu0 %vm409_vm0, %v370_v6  ;;  %v1288_v22 = vld [vmem:[#allocation5 + $0x190] sm:$0xff]  ;;  %v1289_v23 = vld [vmem:[#allocation5 + $0x198] sm:$0xff]  ;;  %3463 = vmatpush3.bf16.msra.mxu0 %v3460_v12  ;;  %v3468_v29 = vpack.c.bf16 %v903_v21, %v902_v19 }
  0x58   : > { %778 = vst [vmem:[#allocation2 + $0x78] sm:$0xff] %v4027_v0  ;;  %779 = vst [vmem:[#allocation2 + $0x80] sm:$0xff] %v4027_v0  ;;  %v3560_v24 = vpack.c.bf16 %v1289_v23, %v1288_v22  ;;  %v375_v25 = vld [vmem:[%s4200_s29 + $0x38] sm:$0xff]  ;;  %v1290_v26 = vld [vmem:[#allocation5 + $0x1a0] sm:$0xff]  ;;  %3465 = vmatprep.subr.bf16.mxu0 %v3464_v17  ;;  %3557 = vmatprep.subr.bf16.mxu1 %v3556_v20 }
  0x59   : > { %780 = vst [vmem:[#allocation2 + $0x88] sm:$0x3] %v4027_v0  ;;  %781 = vst [vmem:[#allocation2 + $0x90] sm:$0xff] %v4027_v0  ;;  %v1291_v27 = vld [vmem:[#allocation5 + $0x1a8] sm:$0xff]  ;;  %v376_v28 = vld [vmem:[%s4200_s29 + $0x40] sm:$0xff]  ;;  %3559 = vmatpush3.bf16.msra.mxu1 %v3556_v20 }
  0x5a   : > { %782 = vst [vmem:[#allocation2 + $0x98] sm:$0xff] %v4027_v0  ;;  %783 = vst [vmem:[#allocation2 + $0xa0] sm:$0x3] %v4027_v0  ;;  %2956 = vmatmul.mubr.msk.f32.gmra.mrb[2].mxu0 %vm409_vm0, %v371_v7  ;;  %v904_v30 = vld [vmem:[#allocation5 + $0xb0] sm:$0xff]  ;;  %v905_v31 = vld [vmem:[#allocation5 + $0xb8] sm:$0xff]  ;;  %3561 = vmatprep.subr.bf16.mxu1 %v3560_v24  ;;  %v3564_v32 = vpack.c.bf16 %v1291_v27, %v1290_v26 }
  0x5b   : > { %784 = vst [vmem:[#allocation2 + $0xa8] sm:$0xff] %v4027_v0  ;;  %785 = vst [vmem:[#allocation2 + $0xb0] sm:$0xff] %v4027_v0  ;;  %2958 = vmatprep.mubr.msk.f32.mxu0 %vm409_vm0, %v372_v8  ;;  %v377_v33 = vld [vmem:[%s4200_s29 + $0x48] sm:$0xff]  ;;  %3467 = vmatpush3.bf16.msra.mxu0 %v3464_v17  ;;  %v378_v34 = vld [vmem:[%s4200_s29 + $0x50] sm:$0xff]  ;;  %v3472_v35 = vpack.c.bf16 %v905_v31, %v904_v30 }
  0x5c   : > { %786 = vst [vmem:[#allocation2 + $0xb8] sm:$0x3] %v4027_v0  ;;  %787 = vst [vmem:[#allocation2 + $0xc0] sm:$0xff] %v4027_v0  ;;  %3469 = vmatprep.subr.bf16.mxu0 %v3468_v29  ;;  %v379_v36 = vld [vmem:[%s4200_s29 + $0x58] sm:$0xff]  ;;  %v380_v37 = vld [vmem:[%s4200_s29 + $0x60] sm:$0xff] }
  0x5d   : > { %788 = vst [vmem:[#allocation2 + $0xc8] sm:$0xff] %v4027_v0  ;;  %789 = vst [vmem:[#allocation2 + $0xd0] sm:$0x3] %v4027_v0  ;;  %3563 = vmatpush3.bf16.msra.mxu1 %v3560_v24  ;;  %v381_v38 = vld [vmem:[%s4200_s29 + $0x68] sm:$0xff]  ;;  %v382_v39 = vld [vmem:[%s4200_s29 + $0x70] sm:$0xff] }
  0x5e   : > { %790 = vst [vmem:[#allocation2 + $0xd8] sm:$0xff] %v4027_v0  ;;  %791 = vst [vmem:[#allocation2 + $0xe0] sm:$0xff] %v4027_v0  ;;  %2959 = vmatmul.mubr.msk.f32.gmra.mrb[4].mxu0 %vm409_vm0, %v373_v9  ;;  %3565 = vmatprep.subr.bf16.mxu1 %v3564_v32  ;;  %v383_v40 = vld [vmem:[%s4200_s29 + $0x78] sm:$0xff]  ;;  %v384_v41 = vld [vmem:[%s4200_s29 + $0x80] sm:$0xff] }
  0x5f   : > { %792 = vst [vmem:[#allocation2 + $0xe8] sm:$0x3] %v4027_v0  ;;  %793 = vst [vmem:[#allocation2 + $0xf0] sm:$0xff] %v4027_v0  ;;  %2961 = vmatprep.mubr.msk.f32.mxu0 %vm409_vm0, %v374_v16  ;;  %3471 = vmatpush3.bf16.msra.mxu0 %v3468_v29  ;;  %v385_v42 = vld [vmem:[%s4200_s29 + $0x88] sm:$0xff]  ;;  %v386_v43 = vld [vmem:[%s4200_s29 + $0x90] sm:$0xff] }
  0x60   : > { %794 = vst [vmem:[#allocation2 + $0xf8] sm:$0xff] %v4027_v0  ;;  %795 = vst [vmem:[#allocation2 + $0x100] sm:$0x3] %v4027_v0  ;;  %3473 = vmatprep.subr.bf16.mxu0 %v3472_v35  ;;  %v387_v44 = vld [vmem:[%s4200_s29 + $0x98] sm:$0xff]  ;;  %v388_v45 = vld [vmem:[%s4200_s29 + $0xa0] sm:$0xff] }
  0x61   : > { %796 = vst [vmem:[#allocation2 + $0x108] sm:$0xff] %v4027_v0  ;;  %797 = vst [vmem:[#allocation2 + $0x110] sm:$0xff] %v4027_v0  ;;  %3567 = vmatpush3.bf16.msra.mxu1 %v3564_v32  ;;  %v389_v46 = vld [vmem:[%s4200_s29 + $0xa8] sm:$0xff]  ;;  %v390_v47 = vld [vmem:[%s4200_s29 + $0xb0] sm:$0xff] }
  0x62   : > { %798 = vst [vmem:[#allocation2 + $0x118] sm:$0x3] %v4027_v0  ;;  %799 = vst [vmem:[#allocation2 + $0x120] sm:$0xff] %v4027_v0  ;;  %2962 = vmatmul.mubr.msk.f32.gmra.mrb[6].mxu0 %vm409_vm0, %v375_v25  ;;  %v391_v48 = vld [vmem:[%s4200_s29 + $0xb8] sm:$0xff]  ;;  %v392_v49 = vld [vmem:[%s4200_s29 + $0xc0] sm:$0xff] }
  0x63   : > { %800 = vst [vmem:[#allocation2 + $0x128] sm:$0xff] %v4027_v0  ;;  %801 = vst [vmem:[#allocation2 + $0x130] sm:$0x3] %v4027_v0  ;;  %2964 = vmatprep.mubr.msk.f32.mxu0 %vm409_vm0, %v376_v28  ;;  %3475 = vmatpush3.bf16.msra.mxu0 %v3472_v35  ;;  %v393_v50 = vld [vmem:[%s4200_s29 + $0xc8] sm:$0xff]  ;;  %v394_v51 = vld [vmem:[%s4200_s29 + $0xd0] sm:$0xff] }
  0x64   : > { %802 = vst [vmem:[#allocation2 + $0x138] sm:$0xff] %v4027_v0  ;;  %803 = vst [vmem:[#allocation2 + $0x140] sm:$0xff] %v4027_v0  ;;  %v395_v52 = vld [vmem:[%s4200_s29 + $0xd8] sm:$0xff]  ;;  %v396_v53 = vld [vmem:[%s4200_s29 + $0xe0] sm:$0xff] }
  0x65   : > { %804 = vst [vmem:[#allocation2 + $0x148] sm:$0x3] %v4027_v0  ;;  %805 = vst [vmem:[#allocation2 + $0x150] sm:$0xff] %v4027_v0  ;;  %v397_v54 = vld [vmem:[%s4200_s29 + $0xe8] sm:$0xff]  ;;  %v398_v55 = vld [vmem:[%s4200_s29 + $0xf0] sm:$0xff] }
  0x66   : > { %806 = vst [vmem:[#allocation2 + $0x158] sm:$0xff] %v4027_v0  ;;  %807 = vst [vmem:[#allocation2 + $0x160] sm:$0x3] %v4027_v0  ;;  %2965 = vmatmul.mubr.msk.f32.gmra.mrb[8].mxu0 %vm409_vm0, %v377_v33  ;;  %v399_v56 = vld [vmem:[%s4200_s29 + $0xf8] sm:$0xff]  ;;  %v906_v57 = vld [vmem:[#allocation5 + $0xc0] sm:$0xff] }
  0x67   : > { %808 = vst [vmem:[#allocation2 + $0x168] sm:$0xff] %v4027_v0  ;;  %809 = vst [vmem:[#allocation2 + $0x170] sm:$0xff] %v4027_v0  ;;  %2967 = vmatprep.mubr.msk.f32.mxu0 %vm409_vm0, %v378_v34  ;;  %v907_v58 = vld [vmem:[#allocation5 + $0xc8] sm:$0xff]  ;;  %v1292_v59 = vld [vmem:[#allocation5 + $0x1b0] sm:$0xff] }
  0x68   : > { %810 = vst [vmem:[#allocation2 + $0x178] sm:$0x3] %v4027_v0  ;;  %811 = vst [vmem:[#allocation2 + $0x180] sm:$0xff] %v4027_v0  ;;  %v3476_v60 = vpack.c.bf16 %v907_v58, %v906_v57  ;;  %v1293_v61 = vld [vmem:[#allocation5 + $0x1b8] sm:$0xff]  ;;  %v908_v63 = vld [vmem:[#allocation5 + $0xd0] sm:$0xff] }
  0x69   : > { %812 = vst [vmem:[#allocation2 + $0x188] sm:$0xff] %v4027_v0  ;;  %813 = vst [vmem:[#allocation2 + $0x190] sm:$0x3] %v4027_v0  ;;  %v3568_v62 = vpack.c.bf16 %v1293_v61, %v1292_v59  ;;  %v909_v0 = vld [vmem:[#allocation5 + $0xd8] sm:$0xff]  ;;  %v1294_v1 = vld [vmem:[#allocation5 + $0x1c0] sm:$0xff] }
  0x6a   : > { %2968 = vmatmul.mubr.msk.f32.gmra.mrb[10].mxu0 %vm409_vm0, %v379_v36  ;;  %3477 = vmatprep.subr.bf16.mxu0 %v3476_v60  ;;  %v3480_v2 = vpack.c.bf16 %v909_v0, %v908_v63  ;;  %v1295_v3 = vld [vmem:[#allocation5 + $0x1c8] sm:$0xff]  ;;  %v910_v5 = vld [vmem:[#allocation5 + $0xe0] sm:$0xff]  ;;  %v1296_v7 = vld [vmem:[#allocation5 + $0x1d0] sm:$0xff] }
  0x6b   : > { %2970 = vmatprep.mubr.msk.f32.mxu0 %vm409_vm0, %v380_v37  ;;  %3569 = vmatprep.subr.bf16.mxu1 %v3568_v62  ;;  %v3572_v4 = vpack.c.bf16 %v1295_v3, %v1294_v1  ;;  %v911_v6 = vld [vmem:[#allocation5 + $0xe8] sm:$0xff]  ;;  %v1297_v9 = vld [vmem:[#allocation5 + $0x1d8] sm:$0xff]  ;;  %v912_v11 = vld [vmem:[#allocation5 + $0xf0] sm:$0xff] }
  0x6c   : > { %3479 = vmatpush3.bf16.msra.mxu0 %v3476_v60  ;;  %3571 = vmatpush3.bf16.msra.mxu1 %v3568_v62  ;;  %v3484_v8 = vpack.c.bf16 %v911_v6, %v910_v5  ;;  %v3576_v10 = vpack.c.bf16 %v1297_v9, %v1296_v7  ;;  %v913_v12 = vld [vmem:[#allocation5 + $0xf8] sm:$0xff]  ;;  %v1298_v13 = vld [vmem:[#allocation5 + $0x1e0] sm:$0xff]  ;;  %v1299_v15 = vld [vmem:[#allocation5 + $0x1e8] sm:$0xff] }
  0x6d   : > { %3481 = vmatprep.subr.bf16.mxu0 %v3480_v2  ;;  %3573 = vmatprep.subr.bf16.mxu1 %v3572_v4  ;;  %v3488_v14 = vpack.c.bf16 %v913_v12, %v912_v11  ;;  %v3580_v16 = vpack.c.bf16 %v1299_v15, %v1298_v13  ;;  %v1300_v17 = vld [vmem:[#allocation5 + $0x1f0] sm:$0xff]  ;;  %v1301_v18 = vld [vmem:[#allocation5 + $0x1f8] sm:$0xff]  ;;  %v865_v21 = vld [vmem:[#allocation5] sm:$0xff] }
  0x6e   : > { %2971 = vmatmul.mubr.msk.f32.gmra.mrb[12].mxu0 %vm409_vm0, %v381_v38  ;;  %v882_v19 = vld [vmem:[#allocation2 + $0x1] ss:$2 sm:$0xff]  ;;  %v3584_v20 = vpack.c.bf16 %v1301_v18, %v1300_v17  ;;  %v866_v22 = vld [vmem:[#allocation5 + $0x8] sm:$0xff]  ;;  %v1432_v24 = vld [vmem:[#allocation5 + $0x200] sm:$0xff] }
  0x6f   : > { %2973 = vmatprep.mubr.msk.f32.mxu0 %vm409_vm0, %v382_v39  ;;  %v3492_v23 = vpack.c.bf16 %v866_v22, %v865_v21  ;;  %v1433_v25 = vld [vmem:[#allocation5 + $0x208] sm:$0xff]  ;;  %v4286_v27 = vld [vmem:[%s4436_s2] ss:$0 sm:$0xff]  ;;  %v869_v57 = vld [vmem:[#allocation5 + $0x20] sm:$0xff] }
  0x70   : > { %3483 = vmatpush3.bf16.msra.mxu0 %v3480_v2  ;;  %3575 = vmatpush3.bf16.msra.mxu1 %v3572_v4  ;;  %v4280_v26 = vpack.c.bf16 %v1433_v25, %v1432_v24  ;;  %v870_v58 = vld [vmem:[#allocation5 + $0x28] sm:$0xff]  ;;  %v1434_v62 = vld [vmem:[#allocation5 + $0x210] sm:$0xff]  ;;  %v1435_v63 = vld [vmem:[#allocation5 + $0x218] sm:$0xff] }
  0x71   : > { %3485 = vmatprep.subr.bf16.mxu0 %v3484_v8  ;;  %3577 = vmatprep.subr.bf16.mxu1 %v3576_v10  ;;  %v3500_v4 = vpack.c.bf16 %v870_v58, %v869_v57  ;;  %v3592_v5 = vpack.c.bf16 %v1435_v63, %v1434_v62  ;;  %v871_v6 = vld [vmem:[#allocation5 + $0x30] sm:$0xff]  ;;  %v872_v7 = vld [vmem:[#allocation5 + $0x38] sm:$0xff]  ;;  %v1436_v11 = vld [vmem:[#allocation5 + $0x220] sm:$0xff] }
  0x72   : > { %2974 = vmatmul.mubr.msk.f32.gmra.mrb[14].mxu0 %vm409_vm0, %v383_v40  ;;  %v1437_v12 = vld [vmem:[#allocation5 + $0x228] sm:$0xff]  ;;  %v3504_v17 = vpack.c.bf16 %v872_v7, %v871_v6  ;;  %v1438_v24 = vld [vmem:[#allocation5 + $0x230] sm:$0xff]  ;;  %v1439_v25 = vld [vmem:[#allocation5 + $0x238] sm:$0xff] }
  0x73   : > { %2976 = vmatprep.mubr.msk.f32.mxu0 %vm409_vm0, %v384_v41  ;;  %v3596_v18 = vpack.c.bf16 %v1437_v12, %v1436_v11 }
  0x74   : > { %3487 = vmatpush3.bf16.msra.mxu0 %v3484_v8  ;;  %3579 = vmatpush3.bf16.msra.mxu1 %v3576_v10 }
  0x75   : > { %3489 = vmatprep.subr.bf16.mxu0 %v3488_v14  ;;  %3581 = vmatprep.subr.bf16.mxu1 %v3580_v16 }
  0x76   : > { %2977 = vmatmul.mubr.msk.f32.gmra.mrb[16].mxu0 %vm409_vm0, %v385_v42 }
  0x77   : > { %2979 = vmatprep.mubr.msk.f32.mxu0 %vm409_vm0, %v386_v43 }
  0x78   : > { %3491 = vmatpush3.bf16.msra.mxu0 %v3488_v14  ;;  %3583 = vmatpush3.bf16.msra.mxu1 %v3580_v16 }
  0x79   : > { %3585 = vmatprep.subr.bf16.mxu1 %v3584_v20  ;;  %3493 = vmatprep.subr.bf16.mxu0 %v3492_v23 }
  0x7a   : > { %2980 = vmatmul.mubr.msk.f32.gmra.mrb[18].mxu0 %vm409_vm0, %v387_v44 }
  0x7b   : > { %2982 = vmatprep.mubr.msk.f32.mxu0 %vm409_vm0, %v388_v45 }
  0x7c   : > { %3587 = vmatpush3.bf16.msra.mxu1 %v3584_v20  ;;  %v874_v20 = vld [vmem:[#allocation5 + $0x48] sm:$0xff] }
  0x7d   : > { %3589 = vmatprep.subr.bf16.mxu1 %v4280_v26 }
  0x7e   : > { %2983 = vmatmul.mubr.msk.f32.gmra.mrb[20].mxu0 %vm409_vm0, %v389_v46 }
  0x7f   : > { %2985 = vmatprep.mubr.msk.f32.mxu0 %vm409_vm0, %v390_v47 }
  0x82   : > { %2986 = vmatmul.mubr.msk.f32.gmra.mrb[22].mxu0 %vm409_vm0, %v391_v48 }
  0x83   : > { %2988 = vmatprep.mubr.msk.f32.mxu0 %vm409_vm0, %v392_v49 }
  0x86   : > { %2989 = vmatmul.mubr.msk.f32.gmra.mrb[24].mxu0 %vm409_vm0, %v393_v50  ;;  %v867_v50 = vld [vmem:[#allocation5 + $0x10] sm:$0xff] }
  0x87   : > { %2991 = vmatprep.mubr.msk.f32.mxu0 %vm409_vm0, %v394_v51  ;;  %v868_v51 = vld [vmem:[#allocation5 + $0x18] sm:$0xff] }
  0x8a   : > { %2992 = vmatmul.mubr.msk.f32.gmra.mrb[26].mxu0 %vm409_vm0, %v395_v52 }
  0x8b   : > { %2994 = vmatprep.mubr.msk.f32.mxu0 %vm409_vm0, %v396_v53 }
  0x8e   : > { %2995 = vmatmul.mubr.msk.f32.gmra.mrb[28].mxu0 %vm409_vm0, %v397_v54 }
  0x8f   : > { %2997 = vmatprep.mubr.msk.f32.mxu0 %vm409_vm0, %v398_v55 }
  0x92   : > { %2998 = vmatmul.mubr.msk.f32.gmra.mrb[30].mxu0 %vm409_vm0, %v399_v56  ;;  %v3496_v56 = vpack.c.bf16 %v868_v51, %v867_v50  ;;  %v1442_v51 = vld [vmem:[#allocation5 + $0x250] sm:$0xff] }
  0x93   : > { %3032 = vmatprep.mubr.f32.mxu0 %v882_v19  ;;  %v873_v19 = vld [vmem:[#allocation5 + $0x40] sm:$0xff] }
 0x129   : > { %v2954_v28 = vpop.f32.mrb[0].mxu0 }
 0x12a   : > { %v578_v29 = vadd.f32 %v2954_v28, %v4286_v27  ;;  %v572_v30 = vpop.f32.mrb[1].mxu0 }
 0x12b   : > { %v573_v31 = vadd.f32 %v4286_v27, %v572_v30 }
 0x12c   : > { %v732_v32 = vmax.f32 %v578_v29, 0.0 }
 0x12d   : > { %v731_v33 = vmax.f32 %v573_v31, 0.0  ;;  %v2957_v34 = vpop.f32.mrb[2].mxu0  ;;  %v3508_v31 = vpack.c.bf16 %v874_v20, %v873_v19 }
 0x12e   : > { %819 = vst [vmem:[#allocation2 + $0x21] sm:$0xff] %v732_v32  ;;  %v588_v35 = vadd.f32 %v2957_v34, %v4286_v27  ;;  %v582_v36 = vpop.f32.mrb[3].mxu0  ;;  %v3600_v32 = vpack.c.bf16 %v1439_v25, %v1438_v24  ;;  %v876_v34 = vld [vmem:[#allocation5 + $0x58] sm:$0xff]  ;;  %v1578_v24 = vld [vmem:[#allocation5 + $0x280] sm:$0xff]  ;;  %v1579_v25 = vld [vmem:[#allocation5 + $0x288] sm:$0xff] }
 0x12f   : > { %818 = vst [vmem:[#allocation2 + $0x19] sm:$0xff] %v731_v33  ;;  %v583_v37 = vadd.f32 %v4286_v27, %v582_v36  ;;  %v875_v33 = vld [vmem:[#allocation5 + $0x50] sm:$0xff] }
 0x130   : > { %v734_v38 = vmax.f32 %v588_v35, 0.0 }
 0x131   : > { %v733_v39 = vmax.f32 %v583_v37, 0.0  ;;  %v2960_v40 = vpop.f32.mrb[4].mxu0 }
 0x132   : > { %821 = vst [vmem:[#allocation2 + $0x39] sm:$0xff] %v734_v38  ;;  %v598_v41 = vadd.f32 %v2960_v40, %v4286_v27  ;;  %v592_v42 = vpop.f32.mrb[5].mxu0  ;;  %v1440_v38 = vld [vmem:[#allocation5 + $0x240] sm:$0xff] }
 0x133   : > { %820 = vst [vmem:[#allocation2 + $0x31] sm:$0xff] %v733_v39  ;;  %v593_v43 = vadd.f32 %v4286_v27, %v592_v42  ;;  %v1441_v39 = vld [vmem:[#allocation5 + $0x248] sm:$0xff] }
 0x134   : > { %v736_v44 = vmax.f32 %v598_v41, 0.0 }
 0x135   : > { %v735_v45 = vmax.f32 %v593_v43, 0.0  ;;  %v2963_v46 = vpop.f32.mrb[6].mxu0 }
 0x136   : > { %823 = vst [vmem:[#allocation2 + $0x51] sm:$0xff] %v736_v44  ;;  %v608_v47 = vadd.f32 %v2963_v46, %v4286_v27  ;;  %v602_v48 = vpop.f32.mrb[7].mxu0  ;;  %v1270_v49 = vld [vmem:[#allocation2 + $0x18] ss:$2 sm:$0xff]  ;;  %v3512_v44 = vpack.c.bf16 %v876_v34, %v875_v33  ;;  %v877_v46 = vld [vmem:[#allocation5 + $0x60] sm:$0xff] }
 0x137   : > { %822 = vst [vmem:[#allocation2 + $0x49] sm:$0xff] %v735_v45  ;;  %v603_v52 = vadd.f32 %v4286_v27, %v602_v48  ;;  %3164 = vmatprep.mubr.f32.mxu1 %v1270_v49  ;;  %v3604_v45 = vpack.c.bf16 %v1441_v39, %v1440_v38 }
 0x138   : > { %v738_v53 = vmax.f32 %v608_v47, 0.0  ;;  %v878_v47 = vld [vmem:[#allocation5 + $0x68] sm:$0xff] }
 0x139   : > { %v737_v54 = vmax.f32 %v603_v52, 0.0  ;;  %v2966_v55 = vpop.f32.mrb[8].mxu0  ;;  %v1443_v52 = vld [vmem:[#allocation5 + $0x258] sm:$0xff]  ;;  %v3516_v57 = vpack.c.bf16 %v878_v47, %v877_v46 }
 0x13a   : > { %825 = vst [vmem:[#allocation2 + $0x69] sm:$0xff] %v738_v53  ;;  %v618_v59 = vadd.f32 %v2966_v55, %v4286_v27  ;;  %v612_v60 = vpop.f32.mrb[9].mxu0  ;;  %v884_v61 = vld [vmem:[#allocation2 + $0x31] ss:$2 sm:$0xff]  ;;  %v3608_v58 = vpack.c.bf16 %v1443_v52, %v1442_v51 }
 0x13b   : > { %824 = vst [vmem:[#allocation2 + $0x61] sm:$0xff] %v737_v54  ;;  %v613_v0 = vadd.f32 %v4286_v27, %v612_v60  ;;  %3033 = vmatmul.mubr.f32.vlgmr.msra.gmra.mrb[32].mxu0 %v884_v61  ;;  %v880_v60 = vld [vmem:[#allocation5 + $0x78] sm:$0xff] }
 0x13c   : > { %v740_v1 = vmax.f32 %v618_v59, 0.0  ;;  %3495 = vmatpush3.bf16.msra.mxu0 %v3492_v23  ;;  %v879_v59 = vld [vmem:[#allocation5 + $0x70] sm:$0xff] }
 0x13d   : > { %v739_v2 = vmax.f32 %v613_v0, 0.0  ;;  %v2969_v3 = vpop.f32.mrb[10].mxu0  ;;  %3497 = vmatprep.subr.bf16.mxu0 %v3496_v56  ;;  %v1444_v0 = vld [vmem:[#allocation5 + $0x260] sm:$0xff]  ;;  %v3520_v6 = vpack.c.bf16 %v880_v60, %v879_v59  ;;  %v1143_v60 = vld [vmem:[#allocation5 + $0x110] sm:$0xff] }
 0x13e   : > { %827 = vst [vmem:[#allocation2 + $0x81] sm:$0xff] %v740_v1  ;;  %v628_v8 = vadd.f32 %v2969_v3, %v4286_v27  ;;  %v622_v9 = vpop.f32.mrb[11].mxu0  ;;  %v1272_v10 = vld [vmem:[#allocation2 + $0x48] ss:$2 sm:$0xff]  ;;  %v1445_v1 = vld [vmem:[#allocation5 + $0x268] sm:$0xff] }
 0x13f   : > { %826 = vst [vmem:[#allocation2 + $0x79] sm:$0xff] %v739_v2  ;;  %v623_v13 = vadd.f32 %v4286_v27, %v622_v9  ;;  %3165 = vmatmul.mubr.f32.vlgmr.msra.gmra.mrb[0].mxu1 %v1272_v10  ;;  %v3612_v7 = vpack.c.bf16 %v1445_v1, %v1444_v0  ;;  %v1142_v9 = vld [vmem:[#allocation5 + $0x108] sm:$0xff]  ;;  %v1145_v0 = vld [vmem:[#allocation5 + $0x120] sm:$0xff] }
 0x140   : > { %v742_v14 = vmax.f32 %v628_v8, 0.0  ;;  %3499 = vmatpush3.bf16.msra.mxu0 %v3496_v56  ;;  %3591 = vmatpush3.bf16.msra.mxu1 %v4280_v26  ;;  %v1141_v8 = vld [vmem:[#allocation5 + $0x100] sm:$0xff] }
 0x141   : > { %v741_v15 = vmax.f32 %v623_v13, 0.0  ;;  %v2972_v16 = vpop.f32.mrb[12].mxu0  ;;  %3501 = vmatprep.subr.bf16.mxu0 %v3500_v4  ;;  %3593 = vmatprep.subr.bf16.mxu1 %v3592_v5  ;;  %v1446_v13 = vld [vmem:[#allocation5 + $0x270] sm:$0xff]  ;;  %v4311_v19 = vpack.c.bf16 %v1142_v9, %v1141_v8  ;;  %v852_v1 = vld [vmem:[#allocation2 + $0x30] ss:$2 sm:$0xff] }
 0x142   : > { %829 = vst [vmem:[#allocation2 + $0x99] sm:$0xff] %v742_v14  ;;  %v638_v21 = vadd.f32 %v2972_v16, %v4286_v27  ;;  %v632_v22 = vpop.f32.mrb[13].mxu0  ;;  %v886_v23 = vld [vmem:[#allocation2 + $0x61] ss:$2 sm:$0xff] }
 0x143   : > { %828 = vst [vmem:[#allocation2 + $0x91] sm:$0xff] %v741_v15  ;;  %v633_v28 = vadd.f32 %v4286_v27, %v632_v22  ;;  %3035 = vmatprep.mubr.f32.mxu0 %v886_v23  ;;  %v1447_v14 = vld [vmem:[#allocation5 + $0x278] sm:$0xff] }
 0x144   : > { %v744_v26 = vmax.f32 %v638_v21, 0.0  ;;  %3503 = vmatpush3.bf16.msra.mxu0 %v3500_v4  ;;  %3595 = vmatpush3.bf16.msra.mxu1 %v3592_v5  ;;  %v3616_v20 = vpack.c.bf16 %v1447_v14, %v1446_v13  ;;  %v1418_v8 = vld [vmem:[#allocation2 + $0x49] ss:$2 sm:$0xff]  ;;  %v1583_v14 = vld [vmem:[#allocation5 + $0x2a8] sm:$0xff] }
 0x145   : > { %v743_v29 = vmax.f32 %v633_v28, 0.0  ;;  %v2975_v30 = vpop.f32.mrb[14].mxu0  ;;  %3505 = vmatprep.subr.bf16.mxu0 %v3504_v17  ;;  %3597 = vmatprep.subr.bf16.mxu1 %v3596_v18  ;;  %v1582_v13 = vld [vmem:[#allocation5 + $0x2a0] sm:$0xff] }
 0x146   : > { %831 = vst [vmem:[#allocation2 + $0xb1] sm:$0xff] %v744_v26  ;;  %v648_v35 = vadd.f32 %v2975_v30, %v4286_v27  ;;  %v642_v36 = vpop.f32.mrb[15].mxu0  ;;  %v1274_v37 = vld [vmem:[#allocation2 + $0x78] ss:$2 sm:$0xff] }
 0x147   : > { %830 = vst [vmem:[#allocation2 + $0xa9] sm:$0xff] %v743_v29  ;;  %v643_v40 = vadd.f32 %v4286_v27, %v642_v36  ;;  %3167 = vmatprep.mubr.f32.mxu1 %v1274_v37 }
 0x148   : > { %v746_v41 = vmax.f32 %v648_v35, 0.0  ;;  %3507 = vmatpush3.bf16.msra.mxu0 %v3504_v17  ;;  %3599 = vmatpush3.bf16.msra.mxu1 %v3596_v18 }
 0x149   : > { %v745_v42 = vmax.f32 %v643_v40, 0.0  ;;  %v2978_v43 = vpop.f32.mrb[16].mxu0  ;;  %3509 = vmatprep.subr.bf16.mxu0 %v3508_v31  ;;  %3601 = vmatprep.subr.bf16.mxu1 %v3600_v32 }
 0x14a   : > { %833 = vst [vmem:[#allocation2 + $0xc9] sm:$0xff] %v746_v41  ;;  %v658_v48 = vadd.f32 %v2978_v43, %v4286_v27  ;;  %v652_v49 = vpop.f32.mrb[17].mxu0  ;;  %v888_v50 = vld [vmem:[#allocation2 + $0x91] ss:$2 sm:$0xff] }
 0x14b   : > { %832 = vst [vmem:[#allocation2 + $0xc1] sm:$0xff] %v745_v42  ;;  %v653_v53 = vadd.f32 %v4286_v27, %v652_v49  ;;  %3036 = vmatmul.mubr.f32.gmra.mrb[34].mxu0 %v888_v50 }
 0x14c   : > { %v748_v54 = vmax.f32 %v658_v48, 0.0  ;;  %3511 = vmatpush3.bf16.msra.mxu0 %v3508_v31  ;;  %3603 = vmatpush3.bf16.msra.mxu1 %v3600_v32  ;;  %v4316_v31 = vpack.c.bf16 %v1579_v25, %v1578_v24  ;;  %v1585_v24 = vld [vmem:[#allocation5 + $0x2b8] sm:$0xff] }
 0x14d   : > { %v747_v55 = vmax.f32 %v653_v53, 0.0  ;;  %v2981_v56 = vpop.f32.mrb[18].mxu0  ;;  %3513 = vmatprep.subr.bf16.mxu0 %v3512_v44  ;;  %3605 = vmatprep.subr.bf16.mxu1 %v3604_v45 }
 0x14e   : > { %835 = vst [vmem:[#allocation2 + $0xe1] sm:$0xff] %v748_v54  ;;  %v668_v61 = vadd.f32 %v2981_v56, %v4286_v27  ;;  %v662_v62 = vpop.f32.mrb[19].mxu0  ;;  %v1276_v63 = vld [vmem:[#allocation2 + $0xa8] ss:$2 sm:$0xff] }
 0x14f   : > { %834 = vst [vmem:[#allocation2 + $0xd9] sm:$0xff] %v747_v55  ;;  %v663_v2 = vadd.f32 %v4286_v27, %v662_v62  ;;  %3168 = vmatmul.mubr.f32.gmra.mrb[2].mxu1 %v1276_v63 }
 0x150   : > { %v750_v3 = vmax.f32 %v668_v61, 0.0  ;;  %3515 = vmatpush3.bf16.msra.mxu0 %v3512_v44  ;;  %3607 = vmatpush3.bf16.msra.mxu1 %v3604_v45  ;;  %v1144_v61 = vld [vmem:[#allocation5 + $0x118] sm:$0xff] }
 0x151   : > { %v749_v4 = vmax.f32 %v663_v2, 0.0  ;;  %v2984_v5 = vpop.f32.mrb[20].mxu0  ;;  %3517 = vmatprep.subr.bf16.mxu0 %v3516_v57  ;;  %3609 = vmatprep.subr.bf16.mxu1 %v3608_v58  ;;  %v3528_v63 = vpack.c.bf16 %v1144_v61, %v1143_v60  ;;  %v1127_v60 = vld [vmem:[#allocation2 + $0x32] ss:$2 sm:$0xff]  ;;  %v1129_v61 = vld [vmem:[#allocation2 + $0x62] ss:$2 sm:$0xff] }
 0x152   : > { %837 = vst [vmem:[#allocation2 + $0xf9] sm:$0xff] %v750_v3  ;;  %v678_v10 = vadd.f32 %v2984_v5, %v4286_v27  ;;  %v672_v11 = vpop.f32.mrb[21].mxu0  ;;  %v890_v12 = vld [vmem:[#allocation2 + $0xc1] ss:$2 sm:$0xff]  ;;  %v1146_v3 = vld [vmem:[#allocation5 + $0x128] sm:$0xff] }
 0x153   : > { %836 = vst [vmem:[#allocation2 + $0xf1] sm:$0xff] %v749_v4  ;;  %v673_v15 = vadd.f32 %v4286_v27, %v672_v11  ;;  %3038 = vmatprep.mubr.f32.mxu0 %v890_v12  ;;  %v854_v4 = vld [vmem:[#allocation2 + $0x60] ss:$2 sm:$0xff]  ;;  %v3532_v9 = vpack.c.bf16 %v1146_v3, %v1145_v0  ;;  %v1728_v3 = vld [vmem:[#allocation5 + $0x320] sm:$0xff] }
 0x154   : > { %v752_v16 = vmax.f32 %v678_v10, 0.0  ;;  %3519 = vmatpush3.bf16.msra.mxu0 %v3516_v57  ;;  %3611 = vmatpush3.bf16.msra.mxu1 %v3608_v58  ;;  %v850_v58 = vld [vmem:[#allocation2] ss:$2 sm:$0xff] }
 0x155   : > { %v751_v17 = vmax.f32 %v673_v15, 0.0  ;;  %v2987_v18 = vpop.f32.mrb[22].mxu0  ;;  %3521 = vmatprep.subr.bf16.mxu0 %v3520_v6  ;;  %3613 = vmatprep.subr.bf16.mxu1 %v3612_v7  ;;  %v1580_v5 = vld [vmem:[#allocation5 + $0x290] sm:$0xff]  ;;  %v1148_v12 = vld [vmem:[#allocation5 + $0x138] sm:$0xff] }
 0x156   : > { %839 = vst [vmem:[#allocation2 + $0x111] sm:$0xff] %v752_v16  ;;  %v688_v21 = vadd.f32 %v2987_v18, %v4286_v27  ;;  %v682_v22 = vpop.f32.mrb[23].mxu0  ;;  %v1278_v23 = vld [vmem:[#allocation2 + $0xd8] ss:$2 sm:$0xff]  ;;  %v1420_v16 = vld [vmem:[#allocation2 + $0x79] ss:$2 sm:$0xff] }
 0x157   : > { %838 = vst [vmem:[#allocation2 + $0x109] sm:$0xff] %v751_v17  ;;  %v683_v28 = vadd.f32 %v4286_v27, %v682_v22  ;;  %3170 = vmatprep.mubr.f32.mxu1 %v1278_v23  ;;  %v1147_v11 = vld [vmem:[#allocation5 + $0x130] sm:$0xff]  ;;  %v1149_v17 = vld [vmem:[#allocation5 + $0x140] sm:$0xff]  ;;  %v1150_v22 = vld [vmem:[#allocation5 + $0x148] sm:$0xff] }
 0x158   : > { %v754_v26 = vmax.f32 %v688_v21, 0.0  ;;  %3523 = vmatpush3.bf16.msra.mxu0 %v3520_v6  ;;  %3615 = vmatpush3.bf16.msra.mxu1 %v3612_v7  ;;  %v1581_v6 = vld [vmem:[#allocation5 + $0x298] sm:$0xff]  ;;  %v856_v7 = vld [vmem:[#allocation2 + $0x90] ss:$2 sm:$0xff]  ;;  %v3628_v21 = vpack.c.bf16 %v1583_v14, %v1582_v13  ;;  %v1584_v23 = vld [vmem:[#allocation5 + $0x2b0] sm:$0xff] }
 0x159   : > { %v753_v29 = vmax.f32 %v683_v28, 0.0  ;;  %v2990_v30 = vpop.f32.mrb[24].mxu0  ;;  %3525 = vmatprep.subr.bf16.mxu0 %v4311_v19  ;;  %3617 = vmatprep.subr.bf16.mxu1 %v3616_v20  ;;  %v3624_v10 = vpack.c.bf16 %v1581_v6, %v1580_v5  ;;  %v858_v15 = vld [vmem:[#allocation2 + $0xc0] ss:$2 sm:$0xff]  ;;  %v1424_v28 = vld [vmem:[#allocation2 + $0xd9] ss:$2 sm:$0xff] }
 0x15a   : > { %841 = vst [vmem:[#allocation2 + $0x129] sm:$0xff] %v754_v26  ;;  %v698_v32 = vadd.f32 %v2990_v30, %v4286_v27  ;;  %v692_v33 = vpop.f32.mrb[25].mxu0  ;;  %v892_v34 = vld [vmem:[#allocation2 + $0xf1] ss:$2 sm:$0xff]  ;;  %v860_v18 = vld [vmem:[#allocation2 + $0xf0] ss:$2 sm:$0xff]  ;;  %v3540_v26 = vpack.c.bf16 %v1150_v22, %v1149_v17 }
 0x15b   : > { %840 = vst [vmem:[#allocation2 + $0x121] sm:$0xff] %v753_v29  ;;  %v693_v35 = vadd.f32 %v4286_v27, %v692_v33  ;;  %3039 = vmatmul.mubr.f32.gmra.mrb[36].mxu0 %v892_v34  ;;  %v1151_v29 = vld [vmem:[#allocation5 + $0x150] sm:$0xff]  ;;  %v1152_v33 = vld [vmem:[#allocation5 + $0x158] sm:$0xff]  ;;  %v1586_v34 = vld [vmem:[#allocation5 + $0x2c0] sm:$0xff] }
 0x15c   : > { %v756_v36 = vmax.f32 %v698_v32, 0.0  ;;  %3619 = vmatpush3.bf16.msra.mxu1 %v3616_v20  ;;  %v3536_v20 = vpack.c.bf16 %v1148_v12, %v1147_v11  ;;  %v3632_v32 = vpack.c.bf16 %v1585_v24, %v1584_v23  ;;  %v1131_v0 = vld [vmem:[#allocation2 + $0x92] ss:$2 sm:$0xff]  ;;  %v1731_v12 = vld [vmem:[#allocation5 + $0x338] sm:$0xff] }
 0x15d   : > { %v755_v37 = vmax.f32 %v693_v35, 0.0  ;;  %v2993_v38 = vpop.f32.mrb[26].mxu0  ;;  %3621 = vmatprep.subr.bf16.mxu1 %v4316_v31  ;;  %v1587_v35 = vld [vmem:[#allocation5 + $0x2c8] sm:$0xff]  ;;  %v1732_v17 = vld [vmem:[#allocation5 + $0x340] sm:$0xff]  ;;  %v1734_v22 = vld [vmem:[#allocation5 + $0x350] sm:$0xff] }
 0x15e   : > { %843 = vst [vmem:[#allocation2 + $0x141] sm:$0xff] %v756_v36  ;;  %v708_v39 = vadd.f32 %v2993_v38, %v4286_v27  ;;  %v702_v40 = vpop.f32.mrb[27].mxu0  ;;  %v1280_v41 = vld [vmem:[#allocation2 + $0x108] ss:$2 sm:$0xff]  ;;  %v3544_v38 = vpack.c.bf16 %v1152_v33, %v1151_v29  ;;  %v1729_v6 = vld [vmem:[#allocation5 + $0x328] sm:$0xff]  ;;  %v1738_v29 = vld [vmem:[#allocation5 + $0x370] sm:$0xff] }
 0x15f   : > { %842 = vst [vmem:[#allocation2 + $0x139] sm:$0xff] %v755_v37  ;;  %v703_v42 = vadd.f32 %v4286_v27, %v702_v40  ;;  %3171 = vmatmul.mubr.f32.gmra.mrb[4].mxu1 %v1280_v41  ;;  %v1125_v36 = vld [vmem:[#allocation2 + $0x2] ss:$2 sm:$0xff]  ;;  %v1154_v40 = vld [vmem:[#allocation5 + $0x168] sm:$0xff] }
 0x160   : > { %v758_v43 = vmax.f32 %v708_v39, 0.0  ;;  %v1153_v39 = vld [vmem:[#allocation5 + $0x160] sm:$0xff]  ;;  %v1566_v5 = vld [vmem:[#allocation2 + $0x7a] ss:$2 sm:$0xff] }
 0x161   : > { %v757_v44 = vmax.f32 %v703_v42, 0.0  ;;  %v2996_v45 = vpop.f32.mrb[28].mxu0  ;;  %v3636_v42 = vpack.c.bf16 %v1587_v35, %v1586_v34  ;;  %v1570_v11 = vld [vmem:[#allocation2 + $0xda] ss:$2 sm:$0xff]  ;;  %v1572_v14 = vld [vmem:[#allocation2 + $0x10a] ss:$2 sm:$0xff] }
 0x162   : > { %845 = vst [vmem:[#allocation2 + $0x159] sm:$0xff] %v758_v43  ;;  %v718_v46 = vadd.f32 %v2996_v45, %v4286_v27  ;;  %v712_v47 = vpop.f32.mrb[29].mxu0  ;;  %v894_v48 = vld [vmem:[#allocation2 + $0x121] ss:$2 sm:$0xff]  ;;  %v862_v25 = vld [vmem:[#allocation2 + $0x120] ss:$2 sm:$0xff] }
 0x163   : > { %844 = vst [vmem:[#allocation2 + $0x151] sm:$0xff] %v757_v44  ;;  %v713_v49 = vadd.f32 %v4286_v27, %v712_v47  ;;  %3041 = vmatprep.mubr.f32.mxu0 %v894_v48  ;;  %v1588_v43 = vld [vmem:[#allocation5 + $0x2d0] sm:$0xff]  ;;  %v1589_v44 = vld [vmem:[#allocation5 + $0x2d8] sm:$0xff]  ;;  %v1871_v33 = vld [vmem:[#allocation5 + $0x388] sm:$0xff] }
 0x164   : > { %v760_v50 = vmax.f32 %v718_v46, 0.0  ;;  %v1562_v45 = vld [vmem:[#allocation2 + $0x1a] ss:$2 sm:$0xff]  ;;  %v3548_v46 = vpack.c.bf16 %v1154_v40, %v1153_v39  ;;  %v3640_v47 = vpack.c.bf16 %v1589_v44, %v1588_v43  ;;  %v1874_v39 = vld [vmem:[#allocation5 + $0x3a0] sm:$0xff] }
 0x165   : > { %v759_v51 = vmax.f32 %v713_v49, 0.0  ;;  %v2999_v52 = vpop.f32.mrb[30].mxu0  ;;  %v1155_v48 = vld [vmem:[#allocation5 + $0x170] sm:$0xff]  ;;  %v1156_v49 = vld [vmem:[#allocation5 + $0x178] sm:$0xff]  ;;  %v1875_v40 = vld [vmem:[#allocation5 + $0x3a8] sm:$0xff] }
 0x166   : > { %847 = vst [vmem:[#allocation2 + $0x171] sm:$0xff] %v760_v50  ;;  %v1282_v53 = vld [vmem:[#allocation2 + $0x138] ss:$2 sm:$0xff]  ;;  %v728_v54 = vadd.f32 %v2999_v52, %v4286_v27  ;;  %v722_v55 = vpop.f32.mrb[31].mxu0  ;;  %v1428_v37 = vld [vmem:[#allocation2 + $0x139] ss:$2 sm:$0xff]  ;;  %v3552_v52 = vpack.c.bf16 %v1156_v49, %v1155_v48 }
 0x167   : > { %846 = vst [vmem:[#allocation2 + $0x169] sm:$0xff] %v759_v51  ;;  %3173 = vmatprep.mubr.f32.mxu1 %v1282_v53  ;;  %v723_v57 = vadd.f32 %v4286_v27, %v722_v55  ;;  %v1416_v27 = vld [vmem:[#allocation2 + $0x19] ss:$2 sm:$0xff]  ;;  %v1590_v50 = vld [vmem:[#allocation5 + $0x2e0] sm:$0xff]  ;;  %v1593_v55 = vld [vmem:[#allocation5 + $0x2f8] sm:$0xff] }
 0x168   : > { %v762_v56 = vmax.f32 %v728_v54, 0.0  ;;  %v1591_v51 = vld [vmem:[#allocation5 + $0x2e8] sm:$0xff]  ;;  %v1592_v54 = vld [vmem:[#allocation5 + $0x2f0] sm:$0xff]  ;;  %v1735_v23 = vld [vmem:[#allocation5 + $0x358] sm:$0xff] }
 0x169   : > { %v761_v62 = vmax.f32 %v723_v57, 0.0  ;;  %v3644_v53 = vpack.c.bf16 %v1591_v51, %v1590_v50  ;;  %v1724_v57 = vld [vmem:[#allocation5 + $0x300] sm:$0xff]  ;;  %v3672_v24 = vpack.c.bf16 %v1735_v23, %v1734_v22  ;;  %v1872_v35 = vld [vmem:[#allocation5 + $0x390] sm:$0xff]  ;;  %v1879_v50 = vld [vmem:[#allocation5 + $0x3c8] sm:$0xff] }
 0x16a   : > { %v896_v59 = vld [vmem:[#allocation2 + $0x151] ss:$2 sm:$0xff]  ;;  %849 = vst [vmem:[#allocation2 + $0x189] sm:$0xff] %v762_v56  ;;  %v864_v30 = vld [vmem:[#allocation2 + $0x150] ss:$2 sm:$0xff]  ;;  %v3648_v56 = vpack.c.bf16 %v1593_v55, %v1592_v54  ;;  %v1876_v44 = vld [vmem:[#allocation5 + $0x3b0] sm:$0xff] }
 0x16b   : > { %3042 = vmatmul.mubr.f32.gmra.mrb[38].mxu0 %v896_v59  ;;  %848 = vst [vmem:[#allocation2 + $0x181] sm:$0xff] %v761_v62  ;;  %v1726_v62 = vld [vmem:[#allocation5 + $0x310] sm:$0xff]  ;;  %v1878_v49 = vld [vmem:[#allocation5 + $0x3c0] sm:$0xff]  ;;  %v1881_v55 = vld [vmem:[#allocation5 + $0x3d8] sm:$0xff] }
 0x16c   : > { %3076 = vmatprep.mubr.f32.mxu0 %v850_v58  ;;  %v1725_v58 = vld [vmem:[#allocation5 + $0x308] sm:$0xff]  ;;  %v1714_v43 = vld [vmem:[#allocation2 + $0xc0] ss:$2 sm:$0xff] }
 0x16d   : > { %v3652_v59 = vpack.c.bf16 %v1725_v58, %v1724_v57  ;;  %v1139_v13 = vld [vmem:[#allocation2 + $0x152] ss:$2 sm:$0xff]  ;;  %v2027_v22 = vld [vmem:[#allocation5 + $0x458] sm:$0xff] }
 0x16e   : > { %v1284_v2 = vld [vmem:[#allocation2 + $0x168] ss:$2 sm:$0xff]  ;;  %v1430_v41 = vld [vmem:[#allocation2 + $0x169] ss:$2 sm:$0xff]  ;;  %v1880_v54 = vld [vmem:[#allocation5 + $0x3d0] sm:$0xff] }
 0x16f   : > { %3077 = vmatmul.mubr.f32.vlgmr.msra.gmra.mrb[32].mxu0 %v852_v1  ;;  %3174 = vmatmul.mubr.f32.gmra.mrb[6].mxu1 %v1284_v2  ;;  %v1564_v1 = vld [vmem:[#allocation2 + $0x4a] ss:$2 sm:$0xff]  ;;  %v3704_v57 = vpack.c.bf16 %v1881_v55, %v1880_v54 }
 0x170   : > { %3527 = vmatpush3.bf16.msra.mxu0 %v4311_v19  ;;  %3079 = vmatprep.mubr.f32.mxu0 %v854_v4  ;;  %v1422_v19 = vld [vmem:[#allocation2 + $0xa9] ss:$2 sm:$0xff]  ;;  %v1133_v4 = vld [vmem:[#allocation2 + $0xc2] ss:$2 sm:$0xff]  ;;  %v2000_v23 = vld [vmem:[#allocation2 + $0x32] ss:$2 sm:$0xff] }
 0x171   : > { %3208 = vmatprep.mubr.f32.mxu1 %v1416_v27  ;;  %3529 = vmatprep.subr.bf16.mxu0 %v3528_v63  ;;  %v1135_v27 = vld [vmem:[#allocation2 + $0xf2] ss:$2 sm:$0xff] }
 0x172   : > { %v1718_v48 = vld [vmem:[#allocation2 + $0x120] ss:$2 sm:$0xff]  ;;  %v1720_v51 = vld [vmem:[#allocation2 + $0x150] ss:$2 sm:$0xff] }
 0x173   : > { %3080 = vmatmul.mubr.f32.gmra.mrb[34].mxu0 %v856_v7  ;;  %3209 = vmatmul.mubr.f32.vlgmr.msra.gmra.mrb[0].mxu1 %v1418_v8  ;;  %v1568_v7 = vld [vmem:[#allocation2 + $0xaa] ss:$2 sm:$0xff]  ;;  %v3660_v8 = vpack.c.bf16 %v1729_v6, %v1728_v3  ;;  %v2018_v3 = vld [vmem:[#allocation5 + $0x410] sm:$0xff] }
 0x174   : > { %3531 = vmatpush3.bf16.msra.mxu0 %v3528_v63  ;;  %3623 = vmatpush3.bf16.msra.mxu1 %v4316_v31  ;;  %v1426_v31 = vld [vmem:[#allocation2 + $0x109] ss:$2 sm:$0xff]  ;;  %v2179_v54 = vld [vmem:[%s4439_s5 + $0x58] sm:$0xff]  ;;  %v2014_v55 = vld [vmem:[#allocation2 + $0x182] ss:$2 sm:$0xff] }
 0x175   : > { %3082 = vmatprep.mubr.f32.mxu0 %v858_v15  ;;  %3211 = vmatprep.mubr.f32.mxu1 %v1420_v16  ;;  %v1727_v63 = vld [vmem:[#allocation5 + $0x318] sm:$0xff]  ;;  %v1882_v58 = vld [vmem:[#allocation5 + $0x3e0] sm:$0xff] }
 0x176   : > { %3533 = vmatprep.subr.bf16.mxu0 %v3532_v9  ;;  %3625 = vmatprep.subr.bf16.mxu1 %v3624_v10  ;;  %v3656_v2 = vpack.c.bf16 %v1727_v63, %v1726_v62  ;;  %v1574_v16 = vld [vmem:[#allocation2 + $0x13a] ss:$2 sm:$0xff]  ;;  %v1856_v6 = vld [vmem:[#allocation2 + $0x61] ss:$2 sm:$0xff] }
 0x177   : > { %3083 = vmatmul.mubr.f32.gmra.mrb[36].mxu0 %v860_v18  ;;  %3212 = vmatmul.mubr.f32.gmra.mrb[2].mxu1 %v1422_v19  ;;  %v1733_v18 = vld [vmem:[#allocation5 + $0x348] sm:$0xff]  ;;  %v1885_v62 = vld [vmem:[#allocation5 + $0x3f8] sm:$0xff] }
 0x178   : > { %3535 = vmatpush3.bf16.msra.mxu0 %v3532_v9  ;;  %3627 = vmatpush3.bf16.msra.mxu1 %v3624_v10  ;;  %v1730_v9 = vld [vmem:[#allocation5 + $0x330] sm:$0xff]  ;;  %v1576_v19 = vld [vmem:[#allocation2 + $0x16a] ss:$2 sm:$0xff] }
 0x179   : > { %3085 = vmatprep.mubr.f32.mxu0 %v862_v25  ;;  %3214 = vmatprep.mubr.f32.mxu1 %v1424_v28  ;;  %v1137_v10 = vld [vmem:[#allocation2 + $0x122] ss:$2 sm:$0xff]  ;;  %v3664_v15 = vpack.c.bf16 %v1731_v12, %v1730_v9  ;;  %v1737_v28 = vld [vmem:[#allocation5 + $0x368] sm:$0xff] }
 0x17a   : > { %3537 = vmatprep.subr.bf16.mxu0 %v3536_v20  ;;  %3629 = vmatprep.subr.bf16.mxu1 %v3628_v21  ;;  %v1736_v25 = vld [vmem:[#allocation5 + $0x360] sm:$0xff]  ;;  %v2023_v12 = vld [vmem:[#allocation5 + $0x438] sm:$0xff] }
 0x17b   : > { %3086 = vmatmul.mubr.f32.gmra.mrb[38].mxu0 %v864_v30  ;;  %3215 = vmatmul.mubr.f32.gmra.mrb[4].mxu1 %v1426_v31  ;;  %v1739_v30 = vld [vmem:[#allocation5 + $0x378] sm:$0xff] }
 0x17c   : > { %3539 = vmatpush3.bf16.msra.mxu0 %v3536_v20  ;;  %3631 = vmatpush3.bf16.msra.mxu1 %v3628_v21  ;;  %v3668_v20 = vpack.c.bf16 %v1733_v18, %v1732_v17  ;;  %v1708_v21 = vld [vmem:[#allocation2 + $0x30] ss:$2 sm:$0xff]  ;;  %v3680_v31 = vpack.c.bf16 %v1739_v30, %v1738_v29  ;;  %v1866_v18 = vld [vmem:[#allocation2 + $0x151] ss:$2 sm:$0xff]  ;;  %v2030_v29 = vld [vmem:[#allocation5 + $0x470] sm:$0xff] }
 0x17d   : > { %3217 = vmatprep.mubr.f32.mxu1 %v1428_v37  ;;  %3541 = vmatprep.subr.bf16.mxu0 %v3540_v26  ;;  %v2025_v17 = vld [vmem:[#allocation5 + $0x448] sm:$0xff]  ;;  %v2031_v30 = vld [vmem:[#allocation5 + $0x478] sm:$0xff] }
 0x17e   : > { %3633 = vmatprep.subr.bf16.mxu1 %v3632_v32  ;;  %3120 = vmatprep.mubr.f32.mxu0 %v1125_v36  ;;  %v1873_v36 = vld [vmem:[#allocation5 + $0x398] sm:$0xff] }
 0x17f   : > { %3218 = vmatmul.mubr.f32.gmra.mrb[6].mxu1 %v1430_v41  ;;  %v3688_v37 = vpack.c.bf16 %v1873_v36, %v1872_v35  ;;  %v1712_v41 = vld [vmem:[#allocation2 + $0x90] ss:$2 sm:$0xff] }
 0x180   : > { %3543 = vmatpush3.bf16.msra.mxu0 %v3540_v26  ;;  %3635 = vmatpush3.bf16.msra.mxu1 %v3632_v32  ;;  %v3676_v26 = vpack.c.bf16 %v1737_v28, %v1736_v25  ;;  %v1870_v32 = vld [vmem:[#allocation5 + $0x380] sm:$0xff]  ;;  %v2029_v28 = vld [vmem:[#allocation5 + $0x468] sm:$0xff] }
 0x181   : > { %3252 = vmatprep.mubr.f32.mxu1 %v1562_v45  ;;  %3545 = vmatprep.subr.bf16.mxu0 %v3544_v38  ;;  %v3684_v34 = vpack.c.bf16 %v1871_v33, %v1870_v32  ;;  %v1877_v45 = vld [vmem:[#allocation5 + $0x3b8] sm:$0xff]  ;;  %v2028_v25 = vld [vmem:[#allocation5 + $0x460] sm:$0xff]  ;;  %v2168_v32 = vld [vmem:[%s4439_s5] sm:$0xff] }
 0x182   : > { %3637 = vmatprep.subr.bf16.mxu1 %v3636_v42  ;;  %v2169_v33 = vld [vmem:[%s4439_s5 + $0x8] sm:$0xff]  ;;  %v2171_v36 = vld [vmem:[%s4439_s5 + $0x18] sm:$0xff] }
 0x183   : > { %v3748_v35 = vpack.c.bf16 %v2169_v33, %v2168_v32 }
 0x184   : > { %3547 = vmatpush3.bf16.msra.mxu0 %v3544_v38  ;;  %3639 = vmatpush3.bf16.msra.mxu1 %v3636_v42  ;;  %v1710_v38 = vld [vmem:[#allocation2 + $0x60] ss:$2 sm:$0xff]  ;;  %v3692_v42 = vpack.c.bf16 %v1875_v40, %v1874_v39 }
 0x185   : > { %3549 = vmatprep.subr.bf16.mxu0 %v3548_v46  ;;  %3641 = vmatprep.subr.bf16.mxu1 %v3640_v47  ;;  %v2173_v39 = vld [vmem:[%s4439_s5 + $0x28] sm:$0xff] }
 0x186   : > { %v2002_v40 = vld [vmem:[#allocation2 + $0x62] ss:$2 sm:$0xff] }
 0x188   : > { %3551 = vmatpush3.bf16.msra.mxu0 %v3548_v46  ;;  %3643 = vmatpush3.bf16.msra.mxu1 %v3640_v47  ;;  %v1716_v46 = vld [vmem:[#allocation2 + $0xf0] ss:$2 sm:$0xff]  ;;  %v3696_v47 = vpack.c.bf16 %v1877_v45, %v1876_v44 }
 0x189   : > { %3553 = vmatprep.subr.bf16.mxu0 %v3552_v52  ;;  %3645 = vmatprep.subr.bf16.mxu1 %v3644_v53  ;;  %v2175_v44 = vld [vmem:[%s4439_s5 + $0x38] sm:$0xff]  ;;  %v2006_v45 = vld [vmem:[#allocation2 + $0xc2] ss:$2 sm:$0xff] }
 0x18c   : > { %3555 = vmatpush3.bf16.msra.mxu0 %v3552_v52  ;;  %3647 = vmatpush3.bf16.msra.mxu1 %v3644_v53  ;;  %v1722_v52 = vld [vmem:[#allocation2 + $0x180] ss:$2 sm:$0xff]  ;;  %v3700_v53 = vpack.c.bf16 %v1879_v50, %v1878_v49 }
 0x18d   : > { %3649 = vmatprep.subr.bf16.mxu1 %v3648_v56  ;;  %3749 = vmatprep.subr.bf16.mxu0 %v3748_v35  ;;  %v2177_v49 = vld [vmem:[%s4439_s5 + $0x48] sm:$0xff] }
 0x18e   : > { %v2010_v50 = vld [vmem:[#allocation2 + $0x122] ss:$2 sm:$0xff] }
 0x18f   : > { %3121 = vmatmul.mubr.f32.vlgmr.msra.gmra.mrb[32].mxu0 %v1127_v60 }
 0x190   : > { %3123 = vmatprep.mubr.f32.mxu0 %v1129_v61  ;;  %3651 = vmatpush3.bf16.msra.mxu1 %v3648_v56  ;;  %v1854_v56 = vld [vmem:[#allocation2 + $0x31] ss:$2 sm:$0xff]  ;;  %v1884_v61 = vld [vmem:[#allocation5 + $0x3f0] sm:$0xff] }
 0x191   : > { %3653 = vmatprep.subr.bf16.mxu1 %v3652_v59  ;;  %v3712_v63 = vpack.c.bf16 %v1885_v62, %v1884_v61  ;;  %3751 = vmatpush3.bf16.msra.mxu0 %v3748_v35  ;;  %v2183_v61 = vld [vmem:[%s4439_s5 + $0x78] sm:$0xff] }
 0x193   : > { %3124 = vmatmul.mubr.f32.gmra.mrb[34].mxu0 %v1131_v0  ;;  %3253 = vmatmul.mubr.f32.vlgmr.msra.gmra.mrb[0].mxu1 %v1564_v1  ;;  %v2016_v0 = vld [vmem:[#allocation5 + $0x400] sm:$0xff]  ;;  %v2017_v1 = vld [vmem:[#allocation5 + $0x408] sm:$0xff] }
 0x194   : > { %3126 = vmatprep.mubr.f32.mxu0 %v1133_v4  ;;  %3255 = vmatprep.mubr.f32.mxu1 %v1566_v5  ;;  %v2019_v4 = vld [vmem:[#allocation5 + $0x418] sm:$0xff] }
 0x195   : > { %3655 = vmatpush3.bf16.msra.mxu1 %v3652_v59  ;;  %v1883_v59 = vld [vmem:[#allocation5 + $0x3e8] sm:$0xff]  ;;  %v3720_v5 = vpack.c.bf16 %v2019_v4, %v2018_v3 }
 0x196   : > { %3657 = vmatprep.subr.bf16.mxu1 %v3656_v2  ;;  %v3708_v60 = vpack.c.bf16 %v1883_v59, %v1882_v58  ;;  %v2181_v58 = vld [vmem:[%s4439_s5 + $0x68] sm:$0xff] }
 0x197   : > { %3127 = vmatmul.mubr.f32.gmra.mrb[36].mxu0 %v1135_v27  ;;  %3256 = vmatmul.mubr.f32.gmra.mrb[2].mxu1 %v1568_v7  ;;  %v2020_v27 = vld [vmem:[#allocation5 + $0x420] sm:$0xff]  ;;  %v2021_v7 = vld [vmem:[#allocation5 + $0x428] sm:$0xff] }
 0x198   : > { %3129 = vmatprep.mubr.f32.mxu0 %v1137_v10  ;;  %3258 = vmatprep.mubr.f32.mxu1 %v1570_v11  ;;  %v3724_v9 = vpack.c.bf16 %v2021_v7, %v2020_v27  ;;  %v1860_v10 = vld [vmem:[#allocation2 + $0xc1] ss:$2 sm:$0xff] }
 0x199   : > { %3659 = vmatpush3.bf16.msra.mxu1 %v3656_v2  ;;  %v3716_v2 = vpack.c.bf16 %v2017_v1, %v2016_v0  ;;  %v2022_v11 = vld [vmem:[#allocation5 + $0x430] sm:$0xff]  ;;  %v2312_v0 = vld [vmem:[%s4441_s7 + $0x8] sm:$0xff] }
 0x19a   : > { %3661 = vmatprep.subr.bf16.mxu1 %v3660_v8 }
 0x19b   : > { %3130 = vmatmul.mubr.f32.gmra.mrb[38].mxu0 %v1139_v13  ;;  %3259 = vmatmul.mubr.f32.gmra.mrb[4].mxu1 %v1572_v14  ;;  %v1862_v13 = vld [vmem:[#allocation2 + $0xf1] ss:$2 sm:$0xff]  ;;  %v3728_v14 = vpack.c.bf16 %v2023_v12, %v2022_v11 }
 0x19c   : > { %3261 = vmatprep.mubr.f32.mxu1 %v1574_v16  ;;  %v2024_v16 = vld [vmem:[#allocation5 + $0x440] sm:$0xff] }
 0x19d   : > { %3663 = vmatpush3.bf16.msra.mxu1 %v3660_v8  ;;  %v1858_v8 = vld [vmem:[#allocation2 + $0x91] ss:$2 sm:$0xff] }
 0x19e   : > { %3665 = vmatprep.subr.bf16.mxu1 %v3664_v15 }
 0x19f   : > { %3262 = vmatmul.mubr.f32.gmra.mrb[6].mxu1 %v1576_v19  ;;  %v3732_v19 = vpack.c.bf16 %v2025_v17, %v2024_v16 }
 0x1a0   : > { %3296 = vmatprep.mubr.f32.mxu1 %v1708_v21  ;;  %v2026_v21 = vld [vmem:[#allocation5 + $0x450] sm:$0xff] }
 0x1a1   : > { %3667 = vmatpush3.bf16.msra.mxu1 %v3664_v15  ;;  %v1864_v15 = vld [vmem:[#allocation2 + $0x121] ss:$2 sm:$0xff] }
 0x1a2   : > { %3669 = vmatprep.subr.bf16.mxu1 %v3668_v20 }
 0x1a5   : > { %3671 = vmatpush3.bf16.msra.mxu1 %v3668_v20  ;;  %v1868_v20 = vld [vmem:[#allocation2 + $0x181] ss:$2 sm:$0xff] }
 0x1a6   : > { %3673 = vmatprep.subr.bf16.mxu1 %v3672_v24 }
 0x1a9   : > { %3675 = vmatpush3.bf16.msra.mxu1 %v3672_v24  ;;  %v3736_v24 = vpack.c.bf16 %v2027_v22, %v2026_v21 }
 0x1aa   : > { %3677 = vmatprep.subr.bf16.mxu1 %v3676_v26 }
 0x1ad   : > { %3679 = vmatpush3.bf16.msra.mxu1 %v3676_v26  ;;  %v3740_v26 = vpack.c.bf16 %v2029_v28, %v2028_v25 }
 0x1ae   : > { %3681 = vmatprep.subr.bf16.mxu1 %v3680_v31 }
 0x1b1   : > { %3683 = vmatpush3.bf16.msra.mxu1 %v3680_v31  ;;  %v3744_v31 = vpack.c.bf16 %v2031_v30, %v2030_v29 }
 0x1b2   : > { %3685 = vmatprep.subr.bf16.mxu1 %v3684_v34 }
 0x1b4   : > { %3297 = vmatmul.mubr.f32.vlgmr.msra.gmra.mrb[0].mxu1 %v1710_v38  ;;  %v2172_v38 = vld [vmem:[%s4439_s5 + $0x20] sm:$0xff] }
 0x1b5   : > { %3299 = vmatprep.mubr.f32.mxu1 %v1712_v41  ;;  %3687 = vmatpush3.bf16.msra.mxu1 %v3684_v34  ;;  %v2170_v34 = vld [vmem:[%s4439_s5 + $0x10] sm:$0xff] }
 0x1b6   : > { %3689 = vmatprep.subr.bf16.mxu1 %v3688_v37  ;;  %v2004_v41 = vld [vmem:[#allocation2 + $0x92] ss:$2 sm:$0xff] }
 0x1b8   : > { %3300 = vmatmul.mubr.f32.gmra.mrb[2].mxu1 %v1714_v43  ;;  %v2174_v43 = vld [vmem:[%s4439_s5 + $0x30] sm:$0xff] }
 0x1b9   : > { %3302 = vmatprep.mubr.f32.mxu1 %v1716_v46  ;;  %3691 = vmatpush3.bf16.msra.mxu1 %v3688_v37  ;;  %v3752_v37 = vpack.c.bf16 %v2171_v36, %v2170_v34  ;;  %v2008_v46 = vld [vmem:[#allocation2 + $0xf2] ss:$2 sm:$0xff] }
 0x1ba   : > { %3693 = vmatprep.subr.bf16.mxu1 %v3692_v42 }
 0x1bb   : > { %3753 = vmatprep.subr.bf16.mxu0 %v3752_v37 }
 0x1bc   : > { %3303 = vmatmul.mubr.f32.gmra.mrb[4].mxu1 %v1718_v48  ;;  %3755 = vmatpush3.bf16.msra.mxu0 %v3752_v37  ;;  %v2176_v48 = vld [vmem:[%s4439_s5 + $0x40] sm:$0xff] }
 0x1bd   : > { %3305 = vmatprep.mubr.f32.mxu1 %v1720_v51  ;;  %3695 = vmatpush3.bf16.msra.mxu1 %v3692_v42  ;;  %v3756_v42 = vpack.c.bf16 %v2173_v39, %v2172_v38  ;;  %v2012_v51 = vld [vmem:[#allocation2 + $0x152] ss:$2 sm:$0xff] }
 0x1be   : > { %3697 = vmatprep.subr.bf16.mxu1 %v3696_v47 }
 0x1bf   : > { %3757 = vmatprep.subr.bf16.mxu0 %v3756_v42 }
 0x1c0   : > { %3306 = vmatmul.mubr.f32.gmra.mrb[6].mxu1 %v1722_v52  ;;  %3759 = vmatpush3.bf16.msra.mxu0 %v3756_v42  ;;  %v3764_v52 = vpack.c.bf16 %v2177_v49, %v2176_v48  ;;  %v2648_v48 = vld [vmem:[%s4200_s29 + $0xa0] ss:$2 sm:$0xff] }
 0x1c1   : > { %3699 = vmatpush3.bf16.msra.mxu1 %v3696_v47  ;;  %3340 = vmatprep.mubr.f32.mxu1 %v1854_v56  ;;  %v3760_v47 = vpack.c.bf16 %v2175_v44, %v2174_v43  ;;  %v2296_v43 = vld [vmem:[%s4200_s29] ss:$2 sm:$0xff] }
 0x1c2   : > { %3701 = vmatprep.subr.bf16.mxu1 %v3700_v53  ;;  %v2644_v44 = vld [vmem:[%s4200_s29 + $0x20] ss:$2 sm:$0xff] }
 0x1c3   : > { %3761 = vmatprep.subr.bf16.mxu0 %v3760_v47  ;;  %v2649_v49 = vld [vmem:[%s4200_s29 + $0xc0] ss:$2 sm:$0xff] }
 0x1c4   : > { %3763 = vmatpush3.bf16.msra.mxu0 %v3760_v47  ;;  %v2647_v47 = vld [vmem:[%s4200_s29 + $0x80] ss:$2 sm:$0xff] }
 0x1c5   : > { %3703 = vmatpush3.bf16.msra.mxu1 %v3700_v53  ;;  %v2178_v53 = vld [vmem:[%s4439_s5 + $0x50] sm:$0xff]  ;;  %3765 = vmatprep.subr.bf16.mxu0 %v3764_v52 }
 0x1c6   : > { %3705 = vmatprep.subr.bf16.mxu1 %v3704_v57  ;;  %v3768_v56 = vpack.c.bf16 %v2179_v54, %v2178_v53 }
 0x1c8   : > { %3767 = vmatpush3.bf16.msra.mxu0 %v3764_v52  ;;  %v2651_v52 = vld [vmem:[%s4442_s8] ss:$0 sm:$0xff] }
 0x1c9   : > { %3707 = vmatpush3.bf16.msra.mxu1 %v3704_v57  ;;  %3769 = vmatprep.subr.bf16.mxu0 %v3768_v56  ;;  %v2180_v57 = vld [vmem:[%s4439_s5 + $0x60] sm:$0xff] }
 0x1ca   : > { %3709 = vmatprep.subr.bf16.mxu1 %v3708_v60  ;;  %v3772_v59 = vpack.c.bf16 %v2181_v58, %v2180_v57 }
 0x1cc   : > { %3771 = vmatpush3.bf16.msra.mxu0 %v3768_v56 }
 0x1cd   : > { %3711 = vmatpush3.bf16.msra.mxu1 %v3708_v60  ;;  %3773 = vmatprep.subr.bf16.mxu0 %v3772_v59  ;;  %v2182_v60 = vld [vmem:[%s4439_s5 + $0x70] sm:$0xff] }
 0x1ce   : > { %3713 = vmatprep.subr.bf16.mxu1 %v3712_v63  ;;  %v3776_v62 = vpack.c.bf16 %v2183_v61, %v2182_v60 }
 0x1d0   : > { %3775 = vmatpush3.bf16.msra.mxu0 %v3772_v59 }
 0x1d1   : > { %3715 = vmatpush3.bf16.msra.mxu1 %v3712_v63  ;;  %3777 = vmatprep.subr.bf16.mxu0 %v3776_v62  ;;  %v2311_v63 = vld [vmem:[%s4441_s7] sm:$0xff] }
 0x1d2   : > { %3717 = vmatprep.subr.bf16.mxu1 %v3716_v2  ;;  %v3780_v1 = vpack.c.bf16 %v2312_v0, %v2311_v63 }
 0x1d4   : > { %3341 = vmatmul.mubr.f32.vlgmr.msra.gmra.mrb[0].mxu1 %v1856_v6  ;;  %3779 = vmatpush3.bf16.msra.mxu0 %v3776_v62 }
 0x1d5   : > { %3343 = vmatprep.mubr.f32.mxu1 %v1858_v8  ;;  %3719 = vmatpush3.bf16.msra.mxu1 %v3716_v2 }
 0x1d6   : > { %3721 = vmatprep.subr.bf16.mxu1 %v3720_v5  ;;  %3781 = vmatprep.subr.bf16.mxu0 %v3780_v1 }
 0x1d8   : > { %3344 = vmatmul.mubr.f32.gmra.mrb[2].mxu1 %v1860_v10  ;;  %v2642_v10 = vld [vmem:[%s4438_s4] ss:$0 sm:$0xff] }
 0x1d9   : > { %3346 = vmatprep.mubr.f32.mxu1 %v1862_v13  ;;  %3723 = vmatpush3.bf16.msra.mxu1 %v3720_v5 }
 0x1da   : > { %3725 = vmatprep.subr.bf16.mxu1 %v3724_v9 }
 0x1dc   : > { %3347 = vmatmul.mubr.f32.gmra.mrb[4].mxu1 %v1864_v15 }
 0x1dd   : > { %3349 = vmatprep.mubr.f32.mxu1 %v1866_v18  ;;  %3727 = vmatpush3.bf16.msra.mxu1 %v3724_v9 }
 0x1de   : > { %3729 = vmatprep.subr.bf16.mxu1 %v3728_v14 }
 0x1e0   : > { %3350 = vmatmul.mubr.f32.gmra.mrb[6].mxu1 %v1868_v20 }
 0x1e1   : > { %3731 = vmatpush3.bf16.msra.mxu1 %v3728_v14  ;;  %3384 = vmatprep.mubr.f32.mxu1 %v2000_v23 }
 0x1e2   : > { %3733 = vmatprep.subr.bf16.mxu1 %v3732_v19 }
 0x1e5   : > { %3735 = vmatpush3.bf16.msra.mxu1 %v3732_v19 }
 0x1e6   : > { %3737 = vmatprep.subr.bf16.mxu1 %v3736_v24 }
 0x1e9   : > { %3739 = vmatpush3.bf16.msra.mxu1 %v3736_v24 }
 0x1ea   : > { %3741 = vmatprep.subr.bf16.mxu1 %v3740_v26 }
 0x1ed   : > { %3743 = vmatpush3.bf16.msra.mxu1 %v3740_v26 }
 0x1ee   : > { %3745 = vmatprep.subr.bf16.mxu1 %v3744_v31 }
 0x1f1   : > { %3747 = vmatpush3.bf16.msra.mxu1 %v3744_v31 }
 0x1f4   : > { %3385 = vmatmul.mubr.f32.vlgmr.msra.gmra.mrb[0].mxu1 %v2002_v40 }
 0x1f5   : > { %3387 = vmatprep.mubr.f32.mxu1 %v2004_v41 }
 0x1f8   : > { %3388 = vmatmul.mubr.f32.gmra.mrb[2].mxu1 %v2006_v45  ;;  %v2645_v45 = vld [vmem:[%s4200_s29 + $0x40] ss:$2 sm:$0xff] }
 0x1f9   : > { %3390 = vmatprep.mubr.f32.mxu1 %v2008_v46  ;;  %v2646_v46 = vld [vmem:[%s4200_s29 + $0x60] ss:$2 sm:$0xff] }
 0x1fc   : > { %3391 = vmatmul.mubr.f32.gmra.mrb[4].mxu1 %v2010_v50  ;;  %v2650_v50 = vld [vmem:[%s4200_s29 + $0xe0] ss:$2 sm:$0xff] }
 0x1fd   : > { %3393 = vmatprep.mubr.f32.mxu1 %v2012_v51  ;;  %v2643_v51 = vld [vmem:[%s4440_s6] ss:$0 sm:$0xff] }
 0x200   : > { %3394 = vmatmul.mubr.f32.gmra.mrb[6].mxu1 %v2014_v55  ;;  %v3798_v55 = vadd.f32 %v2651_v52, %v2643_v51 }
 0x262   : > { %v3122_v2 = vpop.f32.mrb[32].mxu0 }
 0x263   : > { %v1223_v3 = vpop.f32.mrb[33].mxu0 }
 0x266   : > { %v3125_v4 = vpop.f32.mrb[34].mxu0 }
 0x267   : > { %v1233_v5 = vpop.f32.mrb[35].mxu0 }
 0x26a   : > { %v3128_v6 = vpop.f32.mrb[36].mxu0 }
 0x26b   : > { %v1243_v27 = vpop.f32.mrb[37].mxu0 }
 0x26e   : > { %v3131_v7 = vpop.f32.mrb[38].mxu0 }
 0x26f   : > { %v1253_v8 = vpop.f32.mrb[39].mxu0 }
 0x2c7   : > { %v3386_v9 = vpop.f32.mrb[0].mxu1 }
 0x2c8   : > { %v3784_v11 = vadd.f32 %v3386_v9, %v3122_v2  ;;  %v2098_v12 = vpop.f32.mrb[1].mxu1 }
 0x2c9   : > { %v3785_v13 = vadd.f32 %v2098_v12, %v1223_v3 }
 0x2ca   : > { %v2153_v14 = vadd.f32 %v3784_v11, %v2642_v10 }
 0x2cb   : > { %v2152_v15 = vadd.f32 %v3785_v13, %v2642_v10  ;;  %v3389_v16 = vpop.f32.mrb[2].mxu1 }
 0x2cc   : > { %v3786_v17 = vadd.f32 %v3389_v16, %v3125_v4  ;;  %v2108_v18 = vpop.f32.mrb[3].mxu1  ;;  %v2161_v21 = vmax.f32 %v2153_v14, 0.0 }
 0x2cd   : > { %v2160_v19 = vmax.f32 %v2152_v15, 0.0  ;;  %v3787_v20 = vadd.f32 %v2108_v18, %v1233_v5 }
 0x2ce   : > { %v2155_v22 = vadd.f32 %v3786_v17, %v2642_v10 }
 0x2cf   : > { %v2154_v23 = vadd.f32 %v3787_v20, %v2642_v10  ;;  %v3392_v24 = vpop.f32.mrb[4].mxu1  ;;  %3428 = vmatprep.mubr.f32.mxu0 %v2160_v19 }
 0x2d0   : > { %v3788_v25 = vadd.f32 %v3392_v24, %v3128_v6  ;;  %v2118_v28 = vpop.f32.mrb[5].mxu1  ;;  %3429 = vmatmul.mubr.f32.vlgmr.msra.gmra.mrb[40].mxu0 %v2161_v21  ;;  %v2163_v30 = vmax.f32 %v2155_v22, 0.0 }
 0x2d1   : > { %v2162_v26 = vmax.f32 %v2154_v23, 0.0  ;;  %v3789_v29 = vadd.f32 %v2118_v28, %v1243_v27  ;;  %3783 = vmatpush3.bf16.msra.mxu0 %v3780_v1 }
 0x2d2   : > { %v2157_v31 = vadd.f32 %v3788_v25, %v2642_v10 }
 0x2d3   : > { %v2156_v32 = vadd.f32 %v3789_v29, %v2642_v10  ;;  %v3395_v33 = vpop.f32.mrb[6].mxu1  ;;  %3431 = vmatprep.mubr.f32.mxu0 %v2162_v26 }
 0x2d4   : > { %v3790_v34 = vadd.f32 %v3395_v33, %v3131_v7  ;;  %v2128_v35 = vpop.f32.mrb[7].mxu1  ;;  %3432 = vmatmul.mubr.f32.gmra.mrb[42].mxu0 %v2163_v30  ;;  %v2165_v38 = vmax.f32 %v2157_v31, 0.0 }
 0x2d5   : > { %v2164_v36 = vmax.f32 %v2156_v32, 0.0  ;;  %v3791_v37 = vadd.f32 %v2128_v35, %v1253_v8 }
 0x2d6   : > { %v2159_v39 = vadd.f32 %v3790_v34, %v2642_v10 }
 0x2d7   : > { %v2158_v40 = vadd.f32 %v3791_v37, %v2642_v10  ;;  %3434 = vmatprep.mubr.f32.mxu0 %v2164_v36 }
 0x2d8   : > { %3435 = vmatmul.mubr.f32.gmra.mrb[44].mxu0 %v2165_v38  ;;  %v2167_v42 = vmax.f32 %v2159_v39, 0.0 }
 0x2d9   : > { %v2166_v41 = vmax.f32 %v2158_v40, 0.0 }
 0x2db   : > { %3437 = vmatprep.mubr.f32.mxu0 %v2166_v41 }
 0x2dc   : > { %3438 = vmatmul.mubr.f32.gmra.mrb[46].mxu0 %v2167_v42 }
 0x2dd   : > { %3444 = vmatprep.mubr.msk.f32.mxu0 %vm409_vm0, %v2296_v43 }
 0x2e0   : > { %3445 = vmatmul.mubr.msk.f32.vlgmr.msra.gmra.mrb[40].mxu0 %vm409_vm0, %v2644_v44 }
 0x2e1   : > { %3447 = vmatprep.mubr.msk.f32.mxu0 %vm409_vm0, %v2645_v45 }
 0x2e4   : > { %3448 = vmatmul.mubr.msk.f32.gmra.mrb[42].mxu0 %vm409_vm0, %v2646_v46 }
 0x2e5   : > { %3450 = vmatprep.mubr.msk.f32.mxu0 %vm409_vm0, %v2647_v47 }
 0x2e8   : > { %3451 = vmatmul.mubr.msk.f32.gmra.mrb[44].mxu0 %vm409_vm0, %v2648_v48 }
 0x2e9   : > { %3453 = vmatprep.mubr.msk.f32.mxu0 %vm409_vm0, %v2649_v49 }
 0x2ec   : > { %3454 = vmatmul.mubr.msk.f32.gmra.mrb[46].mxu0 %vm409_vm0, %v2650_v50 }
 0x3b3   : > { %v3446_v53 = vpop.f32.mrb[40].mxu0 }
 0x3b4   : > { %v3792_v54 = vadd.f32 %v3446_v53, %v2643_v51  ;;  %v2410_v56 = vpop.f32.mrb[41].mxu0 }
 0x3b5   : > { %v3794_v57 = vadd.f32 %v2643_v51, %v2410_v56 }
 0x3b6   : > { %v3793_v58 = vadd.f32 %v3792_v54, %v2651_v52 }
 0x3b7   : > { %v3795_v59 = vadd.f32 %v3794_v57, %v2651_v52  ;;  %v3449_v60 = vpop.f32.mrb[42].mxu0 }
 0x3b8   : > { %v2458_v61 = vmax.f32 %v3793_v58, 0.0  ;;  %v3797_v62 = vadd.f32 %v3798_v55, %v3449_v60  ;;  %v2420_v63 = vpop.f32.mrb[43].mxu0 }
 0x3b9   : > { %v2457_v0 = vmax.f32 %v3795_v59, 0.0  ;;  %v3799_v1 = vadd.f32 %v3798_v55, %v2420_v63 }
 0x3ba   : > { %2467 = vst.msk [vmem:[%s367_s21 + $0x8] sm:$0xff] %vm2465_vm1, %v2458_v61  ;;  %v2460_v2 = vmax.f32 %v3797_v62, 0.0 }
 0x3bb   : > { %2466 = vst.msk [vmem:[%s367_s21] sm:$0xff] %vm2465_vm1, %v2457_v0  ;;  %v2459_v3 = vmax.f32 %v3799_v1, 0.0  ;;  %v3452_v4 = vpop.f32.mrb[44].mxu0 }
 0x3bc   : > { %2469 = vst.msk [vmem:[%s367_s21 + $0x18] sm:$0xff] %vm2465_vm1, %v2460_v2  ;;  %v3801_v5 = vadd.f32 %v3798_v55, %v3452_v4  ;;  %v2430_v6 = vpop.f32.mrb[45].mxu0 }
 0x3bd   : > { %2468 = vst.msk [vmem:[%s367_s21 + $0x10] sm:$0xff] %vm2465_vm1, %v2459_v3  ;;  %v3803_v27 = vadd.f32 %v3798_v55, %v2430_v6 }
 0x3be   : > { %v2462_v7 = vmax.f32 %v3801_v5, 0.0 }
 0x3bf   : > { %v2461_v8 = vmax.f32 %v3803_v27, 0.0  ;;  %v3455_v9 = vpop.f32.mrb[46].mxu0 }
 0x3c0   : > { %2471 = vst.msk [vmem:[%s367_s21 + $0x28] sm:$0xff] %vm2465_vm1, %v2462_v7  ;;  %v3805_v10 = vadd.f32 %v3798_v55, %v3455_v9  ;;  %v2440_v11 = vpop.f32.mrb[47].mxu0 }
 0x3c1   : > { %2470 = vst.msk [vmem:[%s367_s21 + $0x20] sm:$0xff] %vm2465_vm1, %v2461_v8  ;;  %v3807_v12 = vadd.f32 %v3798_v55, %v2440_v11 }
 0x3c2   : > { %v2464_v13 = vmax.f32 %v3805_v10, 0.0 }
 0x3c3   : > { %v2463_v14 = vmax.f32 %v3807_v12, 0.0 }
 0x3c4   : > { %2473 = vst.msk [vmem:[%s367_s21 + $0x38] sm:$0xff] %vm2465_vm1, %v2464_v13 }
 0x3c5   : > { %2472 = vst.msk [vmem:[%s367_s21 + $0x30] sm:$0xff] %vm2465_vm1, %v2463_v14 }
 0x3c6 PF: > { %p20_p1 = scmp.ge.s32.totalorder %s4122_s19, 4   ;;  %s4455_s30 = smov %s4013_s10 }
 0x3c7   : > { %s4456_s10 = smov %s4017_s11  ;;  %s4457_s11 = smov %s4151_s24 }
 0x3c8   : > { %s4458_s12 = smov %s4122_s19  ;;  %22 = sbr.rel (!%p20_p1) target bundleno = 4 (0x4), region = 186 }
 0x3cf   :  { %2495 = vsyncpa [#allocation4], 1 }
 0x3d0   :  { %2497 = vsyncpa [#allocation4 + $0x1], 1 }
 0x3d1   :  { %2498 = vsyncpa [#allocation6], 1 }

</bundles_post_ra>
